<compile_context>
chip_gen: v7x
topology: tpu7x:2x2x1
jax: 0.10.0
libtpu: 0.0.40
codegen_flags: <defaults>
</compile_context>

<pallas_src>
import math

import jax
import jax.numpy as jnp
from jax import lax
from jax.experimental import pallas as pl
from jax.experimental.pallas import tpu as pltpu

HIDDEN = 32          # hidden_channels
HEADS = 1            # HGTConv default heads=1 (head dim D == HIDDEN)
HEAD_DIM = HIDDEN // HEADS
NUM_ENC_LAYERS = 2   # HeSAGELinker(num_enc_layers=2)

NODE_TYPES = ("functions", "classes", "code")
# synthetic metadata (every node type has >= 1 incoming relation, as HGTConv needs)
EDGE_TYPES = (
    ("functions", "calls",    "functions"),
    ("classes",   "contains", "functions"),
    ("functions", "of",       "classes"),
    ("functions", "in",       "code"),
)

_VMEM = lambda: pl.BlockSpec(memory_space=pltpu.MemorySpace.VMEM)


def _rels_for(dst):
    """Relations targeting `dst`, in a fixed order shared by kernel + mask prep."""
    return [(ri, e) for ri, e in enumerate(EDGE_TYPES) if e[2] == dst]


def _round_up(n, m):
    return ((n + m - 1) // m) * m


# ------------------------------------------------------------------ in-kernel math
def _erf(x):
    # Abramowitz & Stegun 7.1.26 (max abs error ~1.5e-7): matches torch's exact
    # (erf-based) GELU to f32 precision while only using exp/abs/where, which
    # lower on v5e/v6e/v7x.
    a1, a2, a3, a4, a5 = 0.254829592, -0.284496736, 1.421413741, -1.453152027, 1.061405429
    p = 0.3275911
    ax = jnp.abs(x)
    t = 1.0 / (1.0 + p * ax)
    poly = ((((a5 * t + a4) * t + a3) * t + a2) * t + a1) * t
    y = 1.0 - poly * jnp.exp(-ax * ax)
    return jnp.where(x >= 0, y, -y)


def _gelu_exact(x):
    return 0.5 * x * (1.0 + _erf(x * 0.7071067811865476))


# ------------------------------------------------------------------ fused layer kernel
def _hgt_layer_kernel(xf_ref, xc_ref, xd_ref,
                      wq_ref, bq_ref, wout_ref, bout_ref, skip_ref,
                      wk_ref, bk_ref, wm_ref, bm_ref,
                      mf_ref, mc_ref, md_ref,
                      of_ref, oc_ref, od_ref):
    """One full HGTConv layer + GNNEncoder's selective ReLU, for all node types."""
    x = {"functions": xf_ref[...], "classes": xc_ref[...], "code": xd_ref[...]}
    mask_refs = {"functions": mf_ref, "classes": mc_ref, "code": md_ref}
    out_refs = {"functions": of_ref, "classes": oc_ref, "code": od_ref}

    for ti, d in enumerate(NODE_TYPES):
        # q projection (scale already folded into wq/bq on the host, once)
        q = jnp.dot(x[d], wq_ref[ti], preferred_element_type=jnp.float32) + bq_ref[ti]

        # per-relation K / M projections (a_rel * p_rel and m_rel folded into the
        # weights on the host, once) — everything stays in vregs/VMEM.
        k_parts, m_parts = [], []
        for ri, e in _rels_for(d):
            s = e[0]
            k_parts.append(
                jnp.dot(x[s], wk_ref[ri], preferred_element_type=jnp.float32) + bk_ref[ri])
            m_parts.append(
                jnp.dot(x[s], wm_ref[ri], preferred_element_type=jnp.float32) + bm_ref[ri])
        k_all = k_parts[0] if len(k_parts) == 1 else jnp.concatenate(k_parts, axis=0)
        m_all = m_parts[0] if len(m_parts) == 1 else jnp.concatenate(m_parts, axis=0)

        # logits = q . k^T without any host-side transpose (contract last dims)
        logits = lax.dot_general(q, k_all, (((1,), (1,)), ((), ())),
                                 preferred_element_type=jnp.float32)

        # dense masked softmax over all incoming edges (== PyG grouped softmax)
        mask_b = mask_refs[d][...] > 0.0          # computed once, reused
        logits = jnp.where(mask_b, logits, jnp.float32(-1e30))
        lmax = jnp.max(logits, axis=-1, keepdims=True)
        ex = jnp.where(mask_b, jnp.exp(logits - lmax), 0.0)
        denom = jnp.sum(ex, axis=-1, keepdims=True)
        alpha = ex / jnp.maximum(denom, 1e-9)     # rows with no edges -> all-zero alpha

        agg = jnp.dot(alpha, m_all, preferred_element_type=jnp.float32)

        # out = out_lin(gelu(agg)); skip-gated residual; GNNEncoder ReLU (not 'code')
        # TODO(synk): PyG HGTConv skips destination nodes with no incoming edge in
        # its scatter; here the out_lin bias still flows through the skip gate for
        # isolated nodes (same behavior as the previous dense implementation).
        g = _gelu_exact(agg)
        out = jnp.dot(g, wout_ref[ti], preferred_element_type=jnp.float32) + bout_ref[ti]
        gate = jax.nn.sigmoid(skip_ref[ti])       # [1,1] broadcast
        out = gate * out + (1.0 - gate) * x[d]
        if d != "code":
            out = jnp.maximum(out, 0.0)
        out_refs[d][...] = out


def pallas_hgt_layer(x_dict, masks_by_dst, prepped):
    out_shapes = tuple(jax.ShapeDtypeStruct(x_dict[t].shape, jnp.float32) for t in NODE_TYPES)
    outs = pl.pallas_call(
        _hgt_layer_kernel,
        out_shape=out_shapes,
        in_specs=[_VMEM()] * 15,
        out_specs=tuple(_VMEM() for _ in NODE_TYPES),
    )(x_dict["functions"], x_dict["classes"], x_dict["code"],
      prepped["wq"], prepped["bq"], prepped["wout"], prepped["bout"], prepped["skip"],
      prepped["wk"], prepped["bk"], prepped["wm"], prepped["bm"],
      masks_by_dst["functions"], masks_by_dst["classes"], masks_by_dst["code"])
    return dict(zip(NODE_TYPES, outs))


# ------------------------------------------------------------------ fused decoder kernel
def _decoder_kernel(left_ref, right_ref, w1l_ref, w1r_ref, b1_ref, w2_ref, b2_ref, o_ref):
    # Row-wise L2 normalize commutes with the row gather/tile done outside, so
    # normalizing here is identical to torch.nn.functional.normalize(..., dim=1)
    # applied per graph before the concat.
    def l2norm(v):
        n = jnp.sqrt(jnp.sum(v * v, axis=-1, keepdims=True))
        return v / jnp.maximum(n, 1e-12)

    l = l2norm(left_ref[...])
    r = l2norm(right_ref[...])
    # Linear(2H -> H) with the concat folded away: [l | r] @ W1 == l @ W1[:H] + r @ W1[H:]
    h = (jnp.dot(l, w1l_ref[...], preferred_element_type=jnp.float32)
         + jnp.dot(r, w1r_ref[...], preferred_element_type=jnp.float32)
         + b1_ref[...])
    h = jnp.maximum(h, 0.0)
    # final Linear(H -> 1) as a VPU row-reduce instead of a degenerate N=1 matmul
    o_ref[...] = jnp.sum(h * w2_ref[...], axis=-1, keepdims=True) + b2_ref[...]


# ------------------------------------------------------------------ parameters
def init_params(key):
    params = {"layers": []}
    for _ in range(NUM_ENC_LAYERS):
        lp = {"wk": {}, "wq": {}, "wv": {}, "bk": {}, "bq": {}, "bv": {},
              "out_w": {}, "out_b": {}, "skip": {},
              "a_rel": {}, "m_rel": {}, "p_rel": {}}
        for t in NODE_TYPES:
            key, k1, k2, k3, k4 = jax.random.split(key, 5)
            lp["wk"][t] = jax.random.normal(k1, (HIDDEN, HIDDEN), jnp.float32) / jnp.sqrt(HIDDEN)
            lp["wq"][t] = jax.random.normal(k2, (HIDDEN, HIDDEN), jnp.float32) / jnp.sqrt(HIDDEN)
            lp["wv"][t] = jax.random.normal(k3, (HIDDEN, HIDDEN), jnp.float32) / jnp.sqrt(HIDDEN)
            lp["bk"][t] = jnp.zeros((1, HIDDEN), jnp.float32)
            lp["bq"][t] = jnp.zeros((1, HIDDEN), jnp.float32)
            lp["bv"][t] = jnp.zeros((1, HIDDEN), jnp.float32)
            lp["out_w"][t] = jax.random.normal(k4, (HIDDEN, HIDDEN), jnp.float32) / jnp.sqrt(HIDDEN)
            lp["out_b"][t] = jnp.zeros((1, HIDDEN), jnp.float32)
            lp["skip"][t] = jnp.ones((1, 1), jnp.float32)        # PyG init: skip=1
        for e in EDGE_TYPES:
            key, k1, k2 = jax.random.split(key, 3)
            lp["a_rel"][e] = jax.random.normal(k1, (HEAD_DIM, HEAD_DIM), jnp.float32) / jnp.sqrt(HEAD_DIM)
            lp["m_rel"][e] = jax.random.normal(k2, (HEAD_DIM, HEAD_DIM), jnp.float32) / jnp.sqrt(HEAD_DIM)
            lp["p_rel"][e] = jnp.ones((HEADS,), jnp.float32)     # PyG init: p_rel=1
        params["layers"].append(lp)
    key, k1, k2 = jax.random.split(key, 3)
    params["mlp_w1"] = jax.random.normal(k1, (2 * HIDDEN, HIDDEN), jnp.float32) / jnp.sqrt(2 * HIDDEN)
    params["mlp_b1"] = jnp.zeros((1, HIDDEN), jnp.float32)
    params["mlp_w2"] = jax.random.normal(k2, (HIDDEN, 1), jnp.float32) / jnp.sqrt(HIDDEN)
    params["mlp_b2"] = jnp.zeros((1, 1), jnp.float32)
    return params


def prepare_layer_params(lp):
    """One-time host-side weight folding: scale into Q, p_rel*a_rel into K, m_rel into M."""
    scale = 1.0 / math.sqrt(HEAD_DIM)
    prepped = {
        "wq":   jnp.stack([lp["wq"][t] * scale for t in NODE_TYPES]),     # [3,H,H]
        "bq":   jnp.stack([lp["bq"][t] * scale for t in NODE_TYPES]),     # [3,1,H]
        "wout": jnp.stack([lp["out_w"][t] for t in NODE_TYPES]),          # [3,H,H]
        "bout": jnp.stack([lp["out_b"][t] for t in NODE_TYPES]),          # [3,1,H]
        "skip": jnp.stack([lp["skip"][t] for t in NODE_TYPES]),           # [3,1,1]
    }
    wk, bk, wm, bm = [], [], [], []
    for e in EDGE_TYPES:
        s = e[0]
        p = lp["p_rel"][e][0]
        wk.append(lp["wk"][s] @ lp["a_rel"][e] * p)
        bk.append(lp["bk"][s] @ lp["a_rel"][e] * p)
        wm.append(lp["wv"][s] @ lp["m_rel"][e])
        bm.append(lp["bv"][s] @ lp["m_rel"][e])
    prepped["wk"] = jnp.stack(wk)     # [4,H,H]
    prepped["bk"] = jnp.stack(bk)     # [4,1,H]
    prepped["wm"] = jnp.stack(wm)     # [4,H,H]
    prepped["bm"] = jnp.stack(bm)     # [4,1,H]
    return prepped


def prepare_masks(mask_dict):
    """Concatenate per-relation masks per destination type (layer-invariant, done once)."""
    masks_by_dst = {}
    for d in NODE_TYPES:
        parts = [mask_dict[e] for _, e in _rels_for(d)]
        masks_by_dst[d] = parts[0] if len(parts) == 1 else jnp.concatenate(parts, axis=1)
    return masks_by_dst


# ------------------------------------------------------------------ model forward
def decoder_forward(emb_dict, graph_sizes, params):
    """HeLinkPredictionDecoder.forward, batched into a single fused pallas_call."""
    # TODO(synk): self.pair_normalizer (PairNorm) is constructed but never used in the
    # reference forward; omitted here as well.
    f_emb = emb_dict["functions"]
    c_emb = emb_dict["classes"]

    lefts, rights, rows = [], [], []
    fo = co = 0
    for (nf, nc, _nd) in graph_sizes:
        nrow = (nf - 1) + nc
        tgt = f_emb[fo + nf - 1][None, :]
        lefts.append(jnp.concatenate([f_emb[fo:fo + nf - 1], c_emb[co:co + nc]], axis=0))
        rights.append(jnp.tile(tgt, (nrow, 1)))
        rows.append(nrow)
        fo += nf
        co += nc
    left = jnp.concatenate(lefts, axis=0)
    right = jnp.concatenate(rights, axis=0)

    total = left.shape[0]
    padded = _round_up(total, 8)                  # sublane padding for the one MLP call
    if padded != total:
        pad = jnp.zeros((padded - total, HIDDEN), jnp.float32)
        left = jnp.concatenate([left, pad], axis=0)
        right = jnp.concatenate([right, pad], axis=0)

    w1l = params["mlp_w1"][:HIDDEN]               # [H,H]
    w1r = params["mlp_w1"][HIDDEN:]               # [H,H]
    w2_row = params["mlp_w2"].T                   # [1,H]  (score via in-kernel reduce)

    scores_all = pl.pallas_call(
        _decoder_kernel,
        out_shape=jax.ShapeDtypeStruct((padded, 1), jnp.float32),
        in_specs=[_VMEM()] * 7,
        out_specs=_VMEM(),
    )(left, right, w1l, w1r, params["mlp_b1"], w2_row, params["mlp_b2"])

    scores, off = [], 0
    for nrow in rows:
        scores.append(scores_all[off:off + nrow])
        off += nrow
    return scores


def hgt_reranker_forward(x_dict, mask_dict, graph_sizes, params):
    # TODO(synk): `to_hetero(...)` wrapping of an already-heterogeneous HGTConv encoder
    # (and the spurious kwargs={'aggr':'max'}) from the reference are no-ops / invalid;
    # the encoder is applied directly to the hetero dicts.
    masks_by_dst = prepare_masks(mask_dict)
    h = x_dict
    for lp in params["layers"]:
        h = pallas_hgt_layer(h, masks_by_dst, prepare_layer_params(lp))
    return decoder_forward(h, graph_sizes, params)


# ------------------------------------------------------------------ main
if __name__ == "__main__":
    key = jax.random.PRNGKey(0)

    # two small graphs: (n_functions, n_classes, n_code)
    graph_sizes = [(5, 3, 4), (6, 2, 3)]
    totals = {t: sum(g[i] for g in graph_sizes) for i, t in enumerate(NODE_TYPES)}
    padded = {t: _round_up(totals[t], 8) for t in NODE_TYPES}   # sublane-pad node counts

    key, kf, kc, kd = jax.random.split(key, 4)

    def make_x(k, t):
        x = jax.random.normal(k, (totals[t], HIDDEN), jnp.float32)
        if padded[t] != totals[t]:
            x = jnp.concatenate([x, jnp.zeros((padded[t] - totals[t], HIDDEN), jnp.float32)], 0)
        return x

    x_dict = {"functions": make_x(kf, "functions"),
              "classes":   make_x(kc, "classes"),
              "code":      make_x(kd, "code")}

    # dense adjacency masks per edge type, block-diagonal across the two graphs
    # (padded rows/cols stay zero, so they never influence real nodes)
    mask_dict = {}
    for e in EDGE_TYPES:
        s, _, d = e
        mask = jnp.zeros((padded[d], padded[s]), jnp.float32)
        do, so = 0, 0
        for (nf, nc, ncode) in graph_sizes:
            sz = {"functions": nf, "classes": nc, "code": ncode}
            key, kb = jax.random.split(key)
            blk = (jax.random.uniform(kb, (sz[d], sz[s])) < 0.6).astype(jnp.float32)
            mask = mask.at[do:do + sz[d], so:so + sz[s]].set(blk)
            do += sz[d]
            so += sz[s]
        mask_dict[e] = mask

    params = init_params(jax.random.PRNGKey(1))

    scores = hgt_reranker_forward(x_dict, mask_dict, graph_sizes, params)
    scores = jax.block_until_ready(scores)

    # basic sanity on shapes: per-graph scores have (nf-1)+nc rows, 1 column
    for (nf, nc, _), s in zip(graph_sizes, scores):
        assert s.shape == (nf - 1 + nc, 1)
    print("KERNEL_OK")
</pallas_src>

<mosaic_0001>
module attributes {stable_mosaic.version = 11 : i64} {
  func.func @_hgt_layer_kernel(%arg0: memref<16x32xf32, #tpu.memory_space<vmem>>, %arg1: memref<8x32xf32, #tpu.memory_space<vmem>>, %arg2: memref<8x32xf32, #tpu.memory_space<vmem>>, %arg3: memref<3x32x32xf32, #tpu.memory_space<vmem>>, %arg4: memref<3x1x32xf32, #tpu.memory_space<vmem>>, %arg5: memref<3x32x32xf32, #tpu.memory_space<vmem>>, %arg6: memref<3x1x32xf32, #tpu.memory_space<vmem>>, %arg7: memref<3x1x1xf32, #tpu.memory_space<vmem>>, %arg8: memref<4x32x32xf32, #tpu.memory_space<vmem>>, %arg9: memref<4x1x32xf32, #tpu.memory_space<vmem>>, %arg10: memref<4x32x32xf32, #tpu.memory_space<vmem>>, %arg11: memref<4x1x32xf32, #tpu.memory_space<vmem>>, %arg12: memref<16x24xf32, #tpu.memory_space<vmem>>, %arg13: memref<8x16xf32, #tpu.memory_space<vmem>>, %arg14: memref<8x16xf32, #tpu.memory_space<vmem>>, %arg15: memref<16x32xf32, #tpu.memory_space<vmem>>, %arg16: memref<8x32xf32, #tpu.memory_space<vmem>>, %arg17: memref<8x32xf32, #tpu.memory_space<vmem>>) attributes {dimension_semantics = [], scalar_prefetch = 0 : i64, scratch_operands = 0 : i64, tpu.core_type = #tpu.core_type<tc>} {
    %c0 = arith.constant 0 : index
    %c0_0 = arith.constant 0 : index
    %0 = vector.load %arg0[%c0, %c0_0] : memref<16x32xf32, #tpu.memory_space<vmem>>, vector<16x32xf32>
    %c0_1 = arith.constant 0 : index
    %c0_2 = arith.constant 0 : index
    %1 = vector.load %arg1[%c0_1, %c0_2] : memref<8x32xf32, #tpu.memory_space<vmem>>, vector<8x32xf32>
    %c0_3 = arith.constant 0 : index
    %c0_4 = arith.constant 0 : index
    %2 = vector.load %arg2[%c0_3, %c0_4] : memref<8x32xf32, #tpu.memory_space<vmem>>, vector<8x32xf32>
    %c0_5 = arith.constant 0 : index
    %c0_6 = arith.constant 0 : index
    %c0_7 = arith.constant 0 : index
    %3 = vector.load %arg3[%c0_5, %c0_6, %c0_7] : memref<3x32x32xf32, #tpu.memory_space<vmem>>, vector<1x32x32xf32>
    %4 = vector.shape_cast %3 : vector<1x32x32xf32> to vector<32x32xf32>
    %cst = arith.constant dense<0.000000e+00> : vector<16x32xf32>
    %5 = tpu.matmul %0, %4, %cst {dimension_numbers = #tpu.dot_dimension_numbers<[1], [0], [0], [1], [0, 0, 1, 1], [], []>} : vector<16x32xf32>, vector<32x32xf32>, vector<16x32xf32> -> vector<16x32xf32>
    %c0_8 = arith.constant 0 : index
    %c0_9 = arith.constant 0 : index
    %c0_10 = arith.constant 0 : index
    %6 = vector.load %arg4[%c0_8, %c0_9, %c0_10] : memref<3x1x32xf32, #tpu.memory_space<vmem>>, vector<1x1x32xf32>
    %7 = vector.shape_cast %6 : vector<1x1x32xf32> to vector<1x32xf32>
    %8 = vector.broadcast %7 : vector<1x32xf32> to vector<16x32xf32>
    %9 = arith.addf %5, %8 : vector<16x32xf32>
    %c0_11 = arith.constant 0 : index
    %c0_12 = arith.constant 0 : index
    %c0_13 = arith.constant 0 : index
    %10 = vector.load %arg8[%c0_11, %c0_12, %c0_13] : memref<4x32x32xf32, #tpu.memory_space<vmem>>, vector<1x32x32xf32>
    %11 = vector.shape_cast %10 : vector<1x32x32xf32> to vector<32x32xf32>
    %cst_14 = arith.constant dense<0.000000e+00> : vector<16x32xf32>
    %12 = tpu.matmul %0, %11, %cst_14 {dimension_numbers = #tpu.dot_dimension_numbers<[1], [0], [0], [1], [0, 0, 1, 1], [], []>} : vector<16x32xf32>, vector<32x32xf32>, vector<16x32xf32> -> vector<16x32xf32>
    %c0_15 = arith.constant 0 : index
    %c0_16 = arith.constant 0 : index
    %c0_17 = arith.constant 0 : index
    %13 = vector.load %arg9[%c0_15, %c0_16, %c0_17] : memref<4x1x32xf32, #tpu.memory_space<vmem>>, vector<1x1x32xf32>
    %14 = vector.shape_cast %13 : vector<1x1x32xf32> to vector<1x32xf32>
    %15 = vector.broadcast %14 : vector<1x32xf32> to vector<16x32xf32>
    %16 = arith.addf %12, %15 : vector<16x32xf32>
    %c0_18 = arith.constant 0 : index
    %c0_19 = arith.constant 0 : index
    %c0_20 = arith.constant 0 : index
    %17 = vector.load %arg10[%c0_18, %c0_19, %c0_20] : memref<4x32x32xf32, #tpu.memory_space<vmem>>, vector<1x32x32xf32>
    %18 = vector.shape_cast %17 : vector<1x32x32xf32> to vector<32x32xf32>
    %cst_21 = arith.constant dense<0.000000e+00> : vector<16x32xf32>
    %19 = tpu.matmul %0, %18, %cst_21 {dimension_numbers = #tpu.dot_dimension_numbers<[1], [0], [0], [1], [0, 0, 1, 1], [], []>} : vector<16x32xf32>, vector<32x32xf32>, vector<16x32xf32> -> vector<16x32xf32>
    %c0_22 = arith.constant 0 : index
    %c0_23 = arith.constant 0 : index
    %c0_24 = arith.constant 0 : index
    %20 = vector.load %arg11[%c0_22, %c0_23, %c0_24] : memref<4x1x32xf32, #tpu.memory_space<vmem>>, vector<1x1x32xf32>
    %21 = vector.shape_cast %20 : vector<1x1x32xf32> to vector<1x32xf32>
    %22 = vector.broadcast %21 : vector<1x32xf32> to vector<16x32xf32>
    %23 = arith.addf %19, %22 : vector<16x32xf32>
    %c1 = arith.constant 1 : index
    %c0_25 = arith.constant 0 : index
    %c0_26 = arith.constant 0 : index
    %24 = vector.load %arg8[%c1, %c0_25, %c0_26] : memref<4x32x32xf32, #tpu.memory_space<vmem>>, vector<1x32x32xf32>
    %25 = vector.shape_cast %24 : vector<1x32x32xf32> to vector<32x32xf32>
    %cst_27 = arith.constant dense<0.000000e+00> : vector<8x32xf32>
    %26 = tpu.matmul %1, %25, %cst_27 {dimension_numbers = #tpu.dot_dimension_numbers<[1], [0], [0], [1], [0, 0, 1, 1], [], []>} : vector<8x32xf32>, vector<32x32xf32>, vector<8x32xf32> -> vector<8x32xf32>
    %c1_28 = arith.constant 1 : index
    %c0_29 = arith.constant 0 : index
    %c0_30 = arith.constant 0 : index
    %27 = vector.load %arg9[%c1_28, %c0_29, %c0_30] : memref<4x1x32xf32, #tpu.memory_space<vmem>>, vector<1x1x32xf32>
    %28 = vector.shape_cast %27 : vector<1x1x32xf32> to vector<1x32xf32>
    %29 = vector.broadcast %28 : vector<1x32xf32> to vector<8x32xf32>
    %30 = arith.addf %26, %29 : vector<8x32xf32>
    %c1_31 = arith.constant 1 : index
    %c0_32 = arith.constant 0 : index
    %c0_33 = arith.constant 0 : index
    %31 = vector.load %arg10[%c1_31, %c0_32, %c0_33] : memref<4x32x32xf32, #tpu.memory_space<vmem>>, vector<1x32x32xf32>
    %32 = vector.shape_cast %31 : vector<1x32x32xf32> to vector<32x32xf32>
    %cst_34 = arith.constant dense<0.000000e+00> : vector<8x32xf32>
    %33 = tpu.matmul %1, %32, %cst_34 {dimension_numbers = #tpu.dot_dimension_numbers<[1], [0], [0], [1], [0, 0, 1, 1], [], []>} : vector<8x32xf32>, vector<32x32xf32>, vector<8x32xf32> -> vector<8x32xf32>
    %c1_35 = arith.constant 1 : index
    %c0_36 = arith.constant 0 : index
    %c0_37 = arith.constant 0 : index
    %34 = vector.load %arg11[%c1_35, %c0_36, %c0_37] : memref<4x1x32xf32, #tpu.memory_space<vmem>>, vector<1x1x32xf32>
    %35 = vector.shape_cast %34 : vector<1x1x32xf32> to vector<1x32xf32>
    %36 = vector.broadcast %35 : vector<1x32xf32> to vector<8x32xf32>
    %37 = arith.addf %33, %36 : vector<8x32xf32>
    %38 = tpu.concatenate %16, %30 in 0 : vector<16x32xf32>, vector<8x32xf32> -> vector<24x32xf32>
    %39 = tpu.concatenate %23, %37 in 0 : vector<16x32xf32>, vector<8x32xf32> -> vector<24x32xf32>
    %cst_38 = arith.constant dense<0.000000e+00> : vector<16x24xf32>
    %40 = tpu.matmul %9, %38, %cst_38 {dimension_numbers = #tpu.dot_dimension_numbers<[1], [1], [0], [0], [0, 0, 1, 0], [], []>} : vector<16x32xf32>, vector<24x32xf32>, vector<16x24xf32> -> vector<16x24xf32>
    %c0_39 = arith.constant 0 : index
    %c0_40 = arith.constant 0 : index
    %41 = vector.load %arg12[%c0_39, %c0_40] : memref<16x24xf32, #tpu.memory_space<vmem>>, vector<16x24xf32>
    %cst_41 = arith.constant 0.000000e+00 : f32
    %42 = vector.broadcast %cst_41 : f32 to vector<16x24xf32>
    %43 = arith.cmpf ogt, %41, %42 : vector<16x24xf32>
    %cst_42 = arith.constant -1.000000e+30 : f32
    %44 = vector.broadcast %cst_42 : f32 to vector<16x24xf32>
    %45 = arith.select %43, %40, %44 : vector<16x24xi1>, vector<16x24xf32>
    %cst_43 = arith.constant dense<0xFF800000> : vector<16xf32>
    %46 = vector.multi_reduction <maximumf>, %45, %cst_43 [1] : vector<16x24xf32> to vector<16xf32>
    %47 = vector.shape_cast %46 : vector<16xf32> to vector<16x1xf32>
    %48 = vector.broadcast %47 : vector<16x1xf32> to vector<16x24xf32>
    %49 = arith.subf %45, %48 : vector<16x24xf32>
    %50 = math.exp %49 : vector<16x24xf32>
    %cst_44 = arith.constant 0.000000e+00 : f32
    %51 = vector.broadcast %cst_44 : f32 to vector<16x24xf32>
    %52 = arith.select %43, %50, %51 : vector<16x24xi1>, vector<16x24xf32>
    %cst_45 = arith.constant dense<0.000000e+00> : vector<16xf32>
    %53 = vector.multi_reduction <add>, %52, %cst_45 [1] : vector<16x24xf32> to vector<16xf32>
    %54 = vector.shape_cast %53 : vector<16xf32> to vector<16x1xf32>
    %cst_46 = arith.constant 9.99999971E-10 : f32
    %55 = vector.broadcast %cst_46 : f32 to vector<16x1xf32>
    %56 = arith.maximumf %54, %55 : vector<16x1xf32>
    %57 = vector.broadcast %56 : vector<16x1xf32> to vector<16x24xf32>
    %58 = arith.divf %52, %57 : vector<16x24xf32>
    %cst_47 = arith.constant dense<0.000000e+00> : vector<16x32xf32>
    %59 = tpu.matmul %58, %39, %cst_47 {dimension_numbers = #tpu.dot_dimension_numbers<[1], [0], [0], [1], [0, 0, 1, 1], [], []>} : vector<16x24xf32>, vector<24x32xf32>, vector<16x32xf32> -> vector<16x32xf32>
    %cst_48 = arith.constant 5.000000e-01 : f32
    %60 = vector.broadcast %cst_48 : f32 to vector<16x32xf32>
    %61 = arith.mulf %60, %59 : vector<16x32xf32>
    %cst_49 = arith.constant 0.707106769 : f32
    %62 = vector.broadcast %cst_49 : f32 to vector<16x32xf32>
    %63 = arith.mulf %59, %62 : vector<16x32xf32>
    %64 = math.absf %63 : vector<16x32xf32>
    %cst_50 = arith.constant 0.327591091 : f32
    %65 = vector.broadcast %cst_50 : f32 to vector<16x32xf32>
    %66 = arith.mulf %65, %64 : vector<16x32xf32>
    %cst_51 = arith.constant 1.000000e+00 : f32
    %67 = vector.broadcast %cst_51 : f32 to vector<16x32xf32>
    %68 = arith.addf %67, %66 : vector<16x32xf32>
    %cst_52 = arith.constant 1.000000e+00 : f32
    %69 = vector.broadcast %cst_52 : f32 to vector<16x32xf32>
    %70 = arith.divf %69, %68 : vector<16x32xf32>
    %cst_53 = arith.constant 1.06140542 : f32
    %71 = vector.broadcast %cst_53 : f32 to vector<16x32xf32>
    %72 = arith.mulf %71, %70 : vector<16x32xf32>
    %cst_54 = arith.constant -1.45315206 : f32
    %73 = vector.broadcast %cst_54 : f32 to vector<16x32xf32>
    %74 = arith.addf %72, %73 : vector<16x32xf32>
    %75 = arith.mulf %74, %70 : vector<16x32xf32>
    %cst_55 = arith.constant 1.42141378 : f32
    %76 = vector.broadcast %cst_55 : f32 to vector<16x32xf32>
    %77 = arith.addf %75, %76 : vector<16x32xf32>
    %78 = arith.mulf %77, %70 : vector<16x32xf32>
    %cst_56 = arith.constant -0.284496725 : f32
    %79 = vector.broadcast %cst_56 : f32 to vector<16x32xf32>
    %80 = arith.addf %78, %79 : vector<16x32xf32>
    %81 = arith.mulf %80, %70 : vector<16x32xf32>
    %cst_57 = arith.constant 0.254829586 : f32
    %82 = vector.broadcast %cst_57 : f32 to vector<16x32xf32>
    %83 = arith.addf %81, %82 : vector<16x32xf32>
    %84 = arith.mulf %83, %70 : vector<16x32xf32>
    %cst_58 = arith.constant 0.000000e+00 : f32
    %85 = vector.broadcast %cst_58 : f32 to vector<16x32xf32>
    %86 = arith.subf %85, %64 : vector<16x32xf32>
    %87 = arith.mulf %86, %64 : vector<16x32xf32>
    %88 = math.exp %87 : vector<16x32xf32>
    %89 = arith.mulf %84, %88 : vector<16x32xf32>
    %cst_59 = arith.constant 1.000000e+00 : f32
    %90 = vector.broadcast %cst_59 : f32 to vector<16x32xf32>
    %91 = arith.subf %90, %89 : vector<16x32xf32>
    %cst_60 = arith.constant 0.000000e+00 : f32
    %92 = vector.broadcast %cst_60 : f32 to vector<16x32xf32>
    %93 = arith.cmpf oge, %63, %92 : vector<16x32xf32>
    %cst_61 = arith.constant 0.000000e+00 : f32
    %94 = vector.broadcast %cst_61 : f32 to vector<16x32xf32>
    %95 = arith.subf %94, %91 : vector<16x32xf32>
    %96 = arith.select %93, %91, %95 : vector<16x32xi1>, vector<16x32xf32>
    %cst_62 = arith.constant 1.000000e+00 : f32
    %97 = vector.broadcast %cst_62 : f32 to vector<16x32xf32>
    %98 = arith.addf %97, %96 : vector<16x32xf32>
    %99 = arith.mulf %61, %98 : vector<16x32xf32>
    %c0_63 = arith.constant 0 : index
    %c0_64 = arith.constant 0 : index
    %c0_65 = arith.constant 0 : index
    %100 = vector.load %arg5[%c0_63, %c0_64, %c0_65] : memref<3x32x32xf32, #tpu.memory_space<vmem>>, vector<1x32x32xf32>
    %101 = vector.shape_cast %100 : vector<1x32x32xf32> to vector<32x32xf32>
    %cst_66 = arith.constant dense<0.000000e+00> : vector<16x32xf32>
    %102 = tpu.matmul %99, %101, %cst_66 {dimension_numbers = #tpu.dot_dimension_numbers<[1], [0], [0], [1], [0, 0, 1, 1], [], []>} : vector<16x32xf32>, vector<32x32xf32>, vector<16x32xf32> -> vector<16x32xf32>
    %c0_67 = arith.constant 0 : index
    %c0_68 = arith.constant 0 : index
    %c0_69 = arith.constant 0 : index
    %103 = vector.load %arg6[%c0_67, %c0_68, %c0_69] : memref<3x1x32xf32, #tpu.memory_space<vmem>>, vector<1x1x32xf32>
    %104 = vector.shape_cast %103 : vector<1x1x32xf32> to vector<1x32xf32>
    %105 = vector.broadcast %104 : vector<1x32xf32> to vector<16x32xf32>
    %106 = arith.addf %102, %105 : vector<16x32xf32>
    %c0_70 = arith.constant 0 : index
    %c0_71 = arith.constant 0 : index
    %c0_72 = arith.constant 0 : index
    %107 = vector.load %arg7[%c0_70, %c0_71, %c0_72] : memref<3x1x1xf32, #tpu.memory_space<vmem>>, vector<1x1x1xf32>
    %108 = vector.shape_cast %107 : vector<1x1x1xf32> to vector<1x1xf32>
    %109 = arith.negf %108 : vector<1x1xf32>
    %110 = math.exp %109 : vector<1x1xf32>
    %cst_73 = arith.constant 1.000000e+00 : f32
    %111 = vector.broadcast %cst_73 : f32 to vector<1x1xf32>
    %112 = arith.addf %111, %110 : vector<1x1xf32>
    %113 = arith.divf %111, %112 : vector<1x1xf32>
    %114 = vector.broadcast %113 : vector<1x1xf32> to vector<16x32xf32>
    %115 = arith.mulf %114, %106 : vector<16x32xf32>
    %cst_74 = arith.constant 1.000000e+00 : f32
    %116 = vector.broadcast %cst_74 : f32 to vector<1x1xf32>
    %117 = arith.subf %116, %113 : vector<1x1xf32>
    %118 = vector.broadcast %117 : vector<1x1xf32> to vector<16x32xf32>
    %119 = arith.mulf %118, %0 : vector<16x32xf32>
    %120 = arith.addf %115, %119 : vector<16x32xf32>
    %cst_75 = arith.constant 0.000000e+00 : f32
    %121 = vector.broadcast %cst_75 : f32 to vector<16x32xf32>
    %122 = arith.maximumf %120, %121 : vector<16x32xf32>
    %c0_76 = arith.constant 0 : index
    %c0_77 = arith.constant 0 : index
    %123 = vector.load %arg15[%c0_76, %c0_77] : memref<16x32xf32, #tpu.memory_space<vmem>>, vector<16x32xf32>
    tpu.vector_store %arg15[%c0_76, %c0_77], %122 {strides = array<i32>} : memref<16x32xf32, #tpu.memory_space<vmem>>, vector<16x32xf32>,
    %c1_78 = arith.constant 1 : index
    %c0_79 = arith.constant 0 : index
    %c0_80 = arith.constant 0 : index
    %124 = vector.load %arg3[%c1_78, %c0_79, %c0_80] : memref<3x32x32xf32, #tpu.memory_space<vmem>>, vector<1x32x32xf32>
    %125 = vector.shape_cast %124 : vector<1x32x32xf32> to vector<32x32xf32>
    %cst_81 = arith.constant dense<0.000000e+00> : vector<8x32xf32>
    %126 = tpu.matmul %1, %125, %cst_81 {dimension_numbers = #tpu.dot_dimension_numbers<[1], [0], [0], [1], [0, 0, 1, 1], [], []>} : vector<8x32xf32>, vector<32x32xf32>, vector<8x32xf32> -> vector<8x32xf32>
    %c1_82 = arith.constant 1 : index
    %c0_83 = arith.constant 0 : index
    %c0_84 = arith.constant 0 : index
    %127 = vector.load %arg4[%c1_82, %c0_83, %c0_84] : memref<3x1x32xf32, #tpu.memory_space<vmem>>, vector<1x1x32xf32>
    %128 = vector.shape_cast %127 : vector<1x1x32xf32> to vector<1x32xf32>
    %129 = vector.broadcast %128 : vector<1x32xf32> to vector<8x32xf32>
    %130 = arith.addf %126, %129 : vector<8x32xf32>
    %c2 = arith.constant 2 : index
    %c0_85 = arith.constant 0 : index
    %c0_86 = arith.constant 0 : index
    %131 = vector.load %arg8[%c2, %c0_85, %c0_86] : memref<4x32x32xf32, #tpu.memory_space<vmem>>, vector<1x32x32xf32>
    %132 = vector.shape_cast %131 : vector<1x32x32xf32> to vector<32x32xf32>
    %cst_87 = arith.constant dense<0.000000e+00> : vector<16x32xf32>
    %133 = tpu.matmul %0, %132, %cst_87 {dimension_numbers = #tpu.dot_dimension_numbers<[1], [0], [0], [1], [0, 0, 1, 1], [], []>} : vector<16x32xf32>, vector<32x32xf32>, vector<16x32xf32> -> vector<16x32xf32>
    %c2_88 = arith.constant 2 : index
    %c0_89 = arith.constant 0 : index
    %c0_90 = arith.constant 0 : index
    %134 = vector.load %arg9[%c2_88, %c0_89, %c0_90] : memref<4x1x32xf32, #tpu.memory_space<vmem>>, vector<1x1x32xf32>
    %135 = vector.shape_cast %134 : vector<1x1x32xf32> to vector<1x32xf32>
    %136 = vector.broadcast %135 : vector<1x32xf32> to vector<16x32xf32>
    %137 = arith.addf %133, %136 : vector<16x32xf32>
    %c2_91 = arith.constant 2 : index
    %c0_92 = arith.constant 0 : index
    %c0_93 = arith.constant 0 : index
    %138 = vector.load %arg10[%c2_91, %c0_92, %c0_93] : memref<4x32x32xf32, #tpu.memory_space<vmem>>, vector<1x32x32xf32>
    %139 = vector.shape_cast %138 : vector<1x32x32xf32> to vector<32x32xf32>
    %cst_94 = arith.constant dense<0.000000e+00> : vector<16x32xf32>
    %140 = tpu.matmul %0, %139, %cst_94 {dimension_numbers = #tpu.dot_dimension_numbers<[1], [0], [0], [1], [0, 0, 1, 1], [], []>} : vector<16x32xf32>, vector<32x32xf32>, vector<16x32xf32> -> vector<16x32xf32>
    %c2_95 = arith.constant 2 : index
    %c0_96 = arith.constant 0 : index
    %c0_97 = arith.constant 0 : index
    %141 = vector.load %arg11[%c2_95, %c0_96, %c0_97] : memref<4x1x32xf32, #tpu.memory_space<vmem>>, vector<1x1x32xf32>
    %142 = vector.shape_cast %141 : vector<1x1x32xf32> to vector<1x32xf32>
    %143 = vector.broadcast %142 : vector<1x32xf32> to vector<16x32xf32>
    %144 = arith.addf %140, %143 : vector<16x32xf32>
    %cst_98 = arith.constant dense<0.000000e+00> : vector<8x16xf32>
    %145 = tpu.matmul %130, %137, %cst_98 {dimension_numbers = #tpu.dot_dimension_numbers<[1], [1], [0], [0], [0, 0, 1, 0], [], []>} : vector<8x32xf32>, vector<16x32xf32>, vector<8x16xf32> -> vector<8x16xf32>
    %c0_99 = arith.constant 0 : index
    %c0_100 = arith.constant 0 : index
    %146 = vector.load %arg13[%c0_99, %c0_100] : memref<8x16xf32, #tpu.memory_space<vmem>>, vector<8x16xf32>
    %cst_101 = arith.constant 0.000000e+00 : f32
    %147 = vector.broadcast %cst_101 : f32 to vector<8x16xf32>
    %148 = arith.cmpf ogt, %146, %147 : vector<8x16xf32>
    %cst_102 = arith.constant -1.000000e+30 : f32
    %149 = vector.broadcast %cst_102 : f32 to vector<8x16xf32>
    %150 = arith.select %148, %145, %149 : vector<8x16xi1>, vector<8x16xf32>
    %cst_103 = arith.constant dense<0xFF800000> : vector<8xf32>
    %151 = vector.multi_reduction <maximumf>, %150, %cst_103 [1] : vector<8x16xf32> to vector<8xf32>
    %152 = vector.shape_cast %151 : vector<8xf32> to vector<8x1xf32>
    %153 = vector.broadcast %152 : vector<8x1xf32> to vector<8x16xf32>
    %154 = arith.subf %150, %153 : vector<8x16xf32>
    %155 = math.exp %154 : vector<8x16xf32>
    %cst_104 = arith.constant 0.000000e+00 : f32
    %156 = vector.broadcast %cst_104 : f32 to vector<8x16xf32>
    %157 = arith.select %148, %155, %156 : vector<8x16xi1>, vector<8x16xf32>
    %cst_105 = arith.constant dense<0.000000e+00> : vector<8xf32>
    %158 = vector.multi_reduction <add>, %157, %cst_105 [1] : vector<8x16xf32> to vector<8xf32>
    %159 = vector.shape_cast %158 : vector<8xf32> to vector<8x1xf32>
    %cst_106 = arith.constant 9.99999971E-10 : f32
    %160 = vector.broadcast %cst_106 : f32 to vector<8x1xf32>
    %161 = arith.maximumf %159, %160 : vector<8x1xf32>
    %162 = vector.broadcast %161 : vector<8x1xf32> to vector<8x16xf32>
    %163 = arith.divf %157, %162 : vector<8x16xf32>
    %cst_107 = arith.constant dense<0.000000e+00> : vector<8x32xf32>
    %164 = tpu.matmul %163, %144, %cst_107 {dimension_numbers = #tpu.dot_dimension_numbers<[1], [0], [0], [1], [0, 0, 1, 1], [], []>} : vector<8x16xf32>, vector<16x32xf32>, vector<8x32xf32> -> vector<8x32xf32>
    %cst_108 = arith.constant 5.000000e-01 : f32
    %165 = vector.broadcast %cst_108 : f32 to vector<8x32xf32>
    %166 = arith.mulf %165, %164 : vector<8x32xf32>
    %cst_109 = arith.constant 0.707106769 : f32
    %167 = vector.broadcast %cst_109 : f32 to vector<8x32xf32>
    %168 = arith.mulf %164, %167 : vector<8x32xf32>
    %169 = math.absf %168 : vector<8x32xf32>
    %cst_110 = arith.constant 0.327591091 : f32
    %170 = vector.broadcast %cst_110 : f32 to vector<8x32xf32>
    %171 = arith.mulf %170, %169 : vector<8x32xf32>
    %cst_111 = arith.constant 1.000000e+00 : f32
    %172 = vector.broadcast %cst_111 : f32 to vector<8x32xf32>
    %173 = arith.addf %172, %171 : vector<8x32xf32>
    %cst_112 = arith.constant 1.000000e+00 : f32
    %174 = vector.broadcast %cst_112 : f32 to vector<8x32xf32>
    %175 = arith.divf %174, %173 : vector<8x32xf32>
    %cst_113 = arith.constant 1.06140542 : f32
    %176 = vector.broadcast %cst_113 : f32 to vector<8x32xf32>
    %177 = arith.mulf %176, %175 : vector<8x32xf32>
    %cst_114 = arith.constant -1.45315206 : f32
    %178 = vector.broadcast %cst_114 : f32 to vector<8x32xf32>
    %179 = arith.addf %177, %178 : vector<8x32xf32>
    %180 = arith.mulf %179, %175 : vector<8x32xf32>
    %cst_115 = arith.constant 1.42141378 : f32
    %181 = vector.broadcast %cst_115 : f32 to vector<8x32xf32>
    %182 = arith.addf %180, %181 : vector<8x32xf32>
    %183 = arith.mulf %182, %175 : vector<8x32xf32>
    %cst_116 = arith.constant -0.284496725 : f32
    %184 = vector.broadcast %cst_116 : f32 to vector<8x32xf32>
    %185 = arith.addf %183, %184 : vector<8x32xf32>
    %186 = arith.mulf %185, %175 : vector<8x32xf32>
    %cst_117 = arith.constant 0.254829586 : f32
    %187 = vector.broadcast %cst_117 : f32 to vector<8x32xf32>
    %188 = arith.addf %186, %187 : vector<8x32xf32>
    %189 = arith.mulf %188, %175 : vector<8x32xf32>
    %cst_118 = arith.constant 0.000000e+00 : f32
    %190 = vector.broadcast %cst_118 : f32 to vector<8x32xf32>
    %191 = arith.subf %190, %169 : vector<8x32xf32>
    %192 = arith.mulf %191, %169 : vector<8x32xf32>
    %193 = math.exp %192 : vector<8x32xf32>
    %194 = arith.mulf %189, %193 : vector<8x32xf32>
    %cst_119 = arith.constant 1.000000e+00 : f32
    %195 = vector.broadcast %cst_119 : f32 to vector<8x32xf32>
    %196 = arith.subf %195, %194 : vector<8x32xf32>
    %cst_120 = arith.constant 0.000000e+00 : f32
    %197 = vector.broadcast %cst_120 : f32 to vector<8x32xf32>
    %198 = arith.cmpf oge, %168, %197 : vector<8x32xf32>
    %cst_121 = arith.constant 0.000000e+00 : f32
    %199 = vector.broadcast %cst_121 : f32 to vector<8x32xf32>
    %200 = arith.subf %199, %196 : vector<8x32xf32>
    %201 = arith.select %198, %196, %200 : vector<8x32xi1>, vector<8x32xf32>
    %cst_122 = arith.constant 1.000000e+00 : f32
    %202 = vector.broadcast %cst_122 : f32 to vector<8x32xf32>
    %203 = arith.addf %202, %201 : vector<8x32xf32>
    %204 = arith.mulf %166, %203 : vector<8x32xf32>
    %c1_123 = arith.constant 1 : index
    %c0_124 = arith.constant 0 : index
    %c0_125 = arith.constant 0 : index
    %205 = vector.load %arg5[%c1_123, %c0_124, %c0_125] : memref<3x32x32xf32, #tpu.memory_space<vmem>>, vector<1x32x32xf32>
    %206 = vector.shape_cast %205 : vector<1x32x32xf32> to vector<32x32xf32>
    %cst_126 = arith.constant dense<0.000000e+00> : vector<8x32xf32>
    %207 = tpu.matmul %204, %206, %cst_126 {dimension_numbers = #tpu.dot_dimension_numbers<[1], [0], [0], [1], [0, 0, 1, 1], [], []>} : vector<8x32xf32>, vector<32x32xf32>, vector<8x32xf32> -> vector<8x32xf32>
    %c1_127 = arith.constant 1 : index
    %c0_128 = arith.constant 0 : index
    %c0_129 = arith.constant 0 : index
    %208 = vector.load %arg6[%c1_127, %c0_128, %c0_129] : memref<3x1x32xf32, #tpu.memory_space<vmem>>, vector<1x1x32xf32>
    %209 = vector.shape_cast %208 : vector<1x1x32xf32> to vector<1x32xf32>
    %210 = vector.broadcast %209 : vector<1x32xf32> to vector<8x32xf32>
    %211 = arith.addf %207, %210 : vector<8x32xf32>
    %c1_130 = arith.constant 1 : index
    %c0_131 = arith.constant 0 : index
    %c0_132 = arith.constant 0 : index
    %212 = vector.load %arg7[%c1_130, %c0_131, %c0_132] : memref<3x1x1xf32, #tpu.memory_space<vmem>>, vector<1x1x1xf32>
    %213 = vector.shape_cast %212 : vector<1x1x1xf32> to vector<1x1xf32>
    %214 = arith.negf %213 : vector<1x1xf32>
    %215 = math.exp %214 : vector<1x1xf32>
    %cst_133 = arith.constant 1.000000e+00 : f32
    %216 = vector.broadcast %cst_133 : f32 to vector<1x1xf32>
    %217 = arith.addf %216, %215 : vector<1x1xf32>
    %218 = arith.divf %216, %217 : vector<1x1xf32>
    %219 = vector.broadcast %218 : vector<1x1xf32> to vector<8x32xf32>
    %220 = arith.mulf %219, %211 : vector<8x32xf32>
    %cst_134 = arith.constant 1.000000e+00 : f32
    %221 = vector.broadcast %cst_134 : f32 to vector<1x1xf32>
    %222 = arith.subf %221, %218 : vector<1x1xf32>
    %223 = vector.broadcast %222 : vector<1x1xf32> to vector<8x32xf32>
    %224 = arith.mulf %223, %1 : vector<8x32xf32>
    %225 = arith.addf %220, %224 : vector<8x32xf32>
    %cst_135 = arith.constant 0.000000e+00 : f32
    %226 = vector.broadcast %cst_135 : f32 to vector<8x32xf32>
    %227 = arith.maximumf %225, %226 : vector<8x32xf32>
    %c0_136 = arith.constant 0 : index
    %c0_137 = arith.constant 0 : index
    %228 = vector.load %arg16[%c0_136, %c0_137] : memref<8x32xf32, #tpu.memory_space<vmem>>, vector<8x32xf32>
    tpu.vector_store %arg16[%c0_136, %c0_137], %227 {strides = array<i32>} : memref<8x32xf32, #tpu.memory_space<vmem>>, vector<8x32xf32>,
    %c2_138 = arith.constant 2 : index
    %c0_139 = arith.constant 0 : index
    %c0_140 = arith.constant 0 : index
    %229 = vector.load %arg3[%c2_138, %c0_139, %c0_140] : memref<3x32x32xf32, #tpu.memory_space<vmem>>, vector<1x32x32xf32>
    %230 = vector.shape_cast %229 : vector<1x32x32xf32> to vector<32x32xf32>
    %cst_141 = arith.constant dense<0.000000e+00> : vector<8x32xf32>
    %231 = tpu.matmul %2, %230, %cst_141 {dimension_numbers = #tpu.dot_dimension_numbers<[1], [0], [0], [1], [0, 0, 1, 1], [], []>} : vector<8x32xf32>, vector<32x32xf32>, vector<8x32xf32> -> vector<8x32xf32>
    %c2_142 = arith.constant 2 : index
    %c0_143 = arith.constant 0 : index
    %c0_144 = arith.constant 0 : index
    %232 = vector.load %arg4[%c2_142, %c0_143, %c0_144] : memref<3x1x32xf32, #tpu.memory_space<vmem>>, vector<1x1x32xf32>
    %233 = vector.shape_cast %232 : vector<1x1x32xf32> to vector<1x32xf32>
    %234 = vector.broadcast %233 : vector<1x32xf32> to vector<8x32xf32>
    %235 = arith.addf %231, %234 : vector<8x32xf32>
    %c3 = arith.constant 3 : index
    %c0_145 = arith.constant 0 : index
    %c0_146 = arith.constant 0 : index
    %236 = vector.load %arg8[%c3, %c0_145, %c0_146] : memref<4x32x32xf32, #tpu.memory_space<vmem>>, vector<1x32x32xf32>
    %237 = vector.shape_cast %236 : vector<1x32x32xf32> to vector<32x32xf32>
    %cst_147 = arith.constant dense<0.000000e+00> : vector<16x32xf32>
    %238 = tpu.matmul %0, %237, %cst_147 {dimension_numbers = #tpu.dot_dimension_numbers<[1], [0], [0], [1], [0, 0, 1, 1], [], []>} : vector<16x32xf32>, vector<32x32xf32>, vector<16x32xf32> -> vector<16x32xf32>
    %c3_148 = arith.constant 3 : index
    %c0_149 = arith.constant 0 : index
    %c0_150 = arith.constant 0 : index
    %239 = vector.load %arg9[%c3_148, %c0_149, %c0_150] : memref<4x1x32xf32, #tpu.memory_space<vmem>>, vector<1x1x32xf32>
    %240 = vector.shape_cast %239 : vector<1x1x32xf32> to vector<1x32xf32>
    %241 = vector.broadcast %240 : vector<1x32xf32> to vector<16x32xf32>
    %242 = arith.addf %238, %241 : vector<16x32xf32>
    %c3_151 = arith.constant 3 : index
    %c0_152 = arith.constant 0 : index
    %c0_153 = arith.constant 0 : index
    %243 = vector.load %arg10[%c3_151, %c0_152, %c0_153] : memref<4x32x32xf32, #tpu.memory_space<vmem>>, vector<1x32x32xf32>
    %244 = vector.shape_cast %243 : vector<1x32x32xf32> to vector<32x32xf32>
    %cst_154 = arith.constant dense<0.000000e+00> : vector<16x32xf32>
    %245 = tpu.matmul %0, %244, %cst_154 {dimension_numbers = #tpu.dot_dimension_numbers<[1], [0], [0], [1], [0, 0, 1, 1], [], []>} : vector<16x32xf32>, vector<32x32xf32>, vector<16x32xf32> -> vector<16x32xf32>
    %c3_155 = arith.constant 3 : index
    %c0_156 = arith.constant 0 : index
    %c0_157 = arith.constant 0 : index
    %246 = vector.load %arg11[%c3_155, %c0_156, %c0_157] : memref<4x1x32xf32, #tpu.memory_space<vmem>>, vector<1x1x32xf32>
    %247 = vector.shape_cast %246 : vector<1x1x32xf32> to vector<1x32xf32>
    %248 = vector.broadcast %247 : vector<1x32xf32> to vector<16x32xf32>
    %249 = arith.addf %245, %248 : vector<16x32xf32>
    %cst_158 = arith.constant dense<0.000000e+00> : vector<8x16xf32>
    %250 = tpu.matmul %235, %242, %cst_158 {dimension_numbers = #tpu.dot_dimension_numbers<[1], [1], [0], [0], [0, 0, 1, 0], [], []>} : vector<8x32xf32>, vector<16x32xf32>, vector<8x16xf32> -> vector<8x16xf32>
    %c0_159 = arith.constant 0 : index
    %c0_160 = arith.constant 0 : index
    %251 = vector.load %arg14[%c0_159, %c0_160] : memref<8x16xf32, #tpu.memory_space<vmem>>, vector<8x16xf32>
    %cst_161 = arith.constant 0.000000e+00 : f32
    %252 = vector.broadcast %cst_161 : f32 to vector<8x16xf32>
    %253 = arith.cmpf ogt, %251, %252 : vector<8x16xf32>
    %cst_162 = arith.constant -1.000000e+30 : f32
    %254 = vector.broadcast %cst_162 : f32 to vector<8x16xf32>
    %255 = arith.select %253, %250, %254 : vector<8x16xi1>, vector<8x16xf32>
    %cst_163 = arith.constant dense<0xFF800000> : vector<8xf32>
    %256 = vector.multi_reduction <maximumf>, %255, %cst_163 [1] : vector<8x16xf32> to vector<8xf32>
    %257 = vector.shape_cast %256 : vector<8xf32> to vector<8x1xf32>
    %258 = vector.broadcast %257 : vector<8x1xf32> to vector<8x16xf32>
    %259 = arith.subf %255, %258 : vector<8x16xf32>
    %260 = math.exp %259 : vector<8x16xf32>
    %cst_164 = arith.constant 0.000000e+00 : f32
    %261 = vector.broadcast %cst_164 : f32 to vector<8x16xf32>
    %262 = arith.select %253, %260, %261 : vector<8x16xi1>, vector<8x16xf32>
    %cst_165 = arith.constant dense<0.000000e+00> : vector<8xf32>
    %263 = vector.multi_reduction <add>, %262, %cst_165 [1] : vector<8x16xf32> to vector<8xf32>
    %264 = vector.shape_cast %263 : vector<8xf32> to vector<8x1xf32>
    %cst_166 = arith.constant 9.99999971E-10 : f32
    %265 = vector.broadcast %cst_166 : f32 to vector<8x1xf32>
    %266 = arith.maximumf %264, %265 : vector<8x1xf32>
    %267 = vector.broadcast %266 : vector<8x1xf32> to vector<8x16xf32>
    %268 = arith.divf %262, %267 : vector<8x16xf32>
    %cst_167 = arith.constant dense<0.000000e+00> : vector<8x32xf32>
    %269 = tpu.matmul %268, %249, %cst_167 {dimension_numbers = #tpu.dot_dimension_numbers<[1], [0], [0], [1], [0, 0, 1, 1], [], []>} : vector<8x16xf32>, vector<16x32xf32>, vector<8x32xf32> -> vector<8x32xf32>
    %cst_168 = arith.constant 5.000000e-01 : f32
    %270 = vector.broadcast %cst_168 : f32 to vector<8x32xf32>
    %271 = arith.mulf %270, %269 : vector<8x32xf32>
    %cst_169 = arith.constant 0.707106769 : f32
    %272 = vector.broadcast %cst_169 : f32 to vector<8x32xf32>
    %273 = arith.mulf %269, %272 : vector<8x32xf32>
    %274 = math.absf %273 : vector<8x32xf32>
    %cst_170 = arith.constant 0.327591091 : f32
    %275 = vector.broadcast %cst_170 : f32 to vector<8x32xf32>
    %276 = arith.mulf %275, %274 : vector<8x32xf32>
    %cst_171 = arith.constant 1.000000e+00 : f32
    %277 = vector.broadcast %cst_171 : f32 to vector<8x32xf32>
    %278 = arith.addf %277, %276 : vector<8x32xf32>
    %cst_172 = arith.constant 1.000000e+00 : f32
    %279 = vector.broadcast %cst_172 : f32 to vector<8x32xf32>
    %280 = arith.divf %279, %278 : vector<8x32xf32>
    %cst_173 = arith.constant 1.06140542 : f32
    %281 = vector.broadcast %cst_173 : f32 to vector<8x32xf32>
    %282 = arith.mulf %281, %280 : vector<8x32xf32>
    %cst_174 = arith.constant -1.45315206 : f32
    %283 = vector.broadcast %cst_174 : f32 to vector<8x32xf32>
    %284 = arith.addf %282, %283 : vector<8x32xf32>
    %285 = arith.mulf %284, %280 : vector<8x32xf32>
    %cst_175 = arith.constant 1.42141378 : f32
    %286 = vector.broadcast %cst_175 : f32 to vector<8x32xf32>
    %287 = arith.addf %285, %286 : vector<8x32xf32>
    %288 = arith.mulf %287, %280 : vector<8x32xf32>
    %cst_176 = arith.constant -0.284496725 : f32
    %289 = vector.broadcast %cst_176 : f32 to vector<8x32xf32>
    %290 = arith.addf %288, %289 : vector<8x32xf32>
    %291 = arith.mulf %290, %280 : vector<8x32xf32>
    %cst_177 = arith.constant 0.254829586 : f32
    %292 = vector.broadcast %cst_177 : f32 to vector<8x32xf32>
    %293 = arith.addf %291, %292 : vector<8x32xf32>
    %294 = arith.mulf %293, %280 : vector<8x32xf32>
    %cst_178 = arith.constant 0.000000e+00 : f32
    %295 = vector.broadcast %cst_178 : f32 to vector<8x32xf32>
    %296 = arith.subf %295, %274 : vector<8x32xf32>
    %297 = arith.mulf %296, %274 : vector<8x32xf32>
    %298 = math.exp %297 : vector<8x32xf32>
    %299 = arith.mulf %294, %298 : vector<8x32xf32>
    %cst_179 = arith.constant 1.000000e+00 : f32
    %300 = vector.broadcast %cst_179 : f32 to vector<8x32xf32>
    %301 = arith.subf %300, %299 : vector<8x32xf32>
    %cst_180 = arith.constant 0.000000e+00 : f32
    %302 = vector.broadcast %cst_180 : f32 to vector<8x32xf32>
    %303 = arith.cmpf oge, %273, %302 : vector<8x32xf32>
    %cst_181 = arith.constant 0.000000e+00 : f32
    %304 = vector.broadcast %cst_181 : f32 to vector<8x32xf32>
    %305 = arith.subf %304, %301 : vector<8x32xf32>
    %306 = arith.select %303, %301, %305 : vector<8x32xi1>, vector<8x32xf32>
    %cst_182 = arith.constant 1.000000e+00 : f32
    %307 = vector.broadcast %cst_182 : f32 to vector<8x32xf32>
    %308 = arith.addf %307, %306 : vector<8x32xf32>
    %309 = arith.mulf %271, %308 : vector<8x32xf32>
    %c2_183 = arith.constant 2 : index
    %c0_184 = arith.constant 0 : index
    %c0_185 = arith.constant 0 : index
    %310 = vector.load %arg5[%c2_183, %c0_184, %c0_185] : memref<3x32x32xf32, #tpu.memory_space<vmem>>, vector<1x32x32xf32>
    %311 = vector.shape_cast %310 : vector<1x32x32xf32> to vector<32x32xf32>
    %cst_186 = arith.constant dense<0.000000e+00> : vector<8x32xf32>
    %312 = tpu.matmul %309, %311, %cst_186 {dimension_numbers = #tpu.dot_dimension_numbers<[1], [0], [0], [1], [0, 0, 1, 1], [], []>} : vector<8x32xf32>, vector<32x32xf32>, vector<8x32xf32> -> vector<8x32xf32>
    %c2_187 = arith.constant 2 : index
    %c0_188 = arith.constant 0 : index
    %c0_189 = arith.constant 0 : index
    %313 = vector.load %arg6[%c2_187, %c0_188, %c0_189] : memref<3x1x32xf32, #tpu.memory_space<vmem>>, vector<1x1x32xf32>
    %314 = vector.shape_cast %313 : vector<1x1x32xf32> to vector<1x32xf32>
    %315 = vector.broadcast %314 : vector<1x32xf32> to vector<8x32xf32>
    %316 = arith.addf %312, %315 : vector<8x32xf32>
    %c2_190 = arith.constant 2 : index
    %c0_191 = arith.constant 0 : index
    %c0_192 = arith.constant 0 : index
    %317 = vector.load %arg7[%c2_190, %c0_191, %c0_192] : memref<3x1x1xf32, #tpu.memory_space<vmem>>, vector<1x1x1xf32>
    %318 = vector.shape_cast %317 : vector<1x1x1xf32> to vector<1x1xf32>
    %319 = arith.negf %318 : vector<1x1xf32>
    %320 = math.exp %319 : vector<1x1xf32>
    %cst_193 = arith.constant 1.000000e+00 : f32
    %321 = vector.broadcast %cst_193 : f32 to vector<1x1xf32>
    %322 = arith.addf %321, %320 : vector<1x1xf32>
    %323 = arith.divf %321, %322 : vector<1x1xf32>
    %324 = vector.broadcast %323 : vector<1x1xf32> to vector<8x32xf32>
    %325 = arith.mulf %324, %316 : vector<8x32xf32>
    %cst_194 = arith.constant 1.000000e+00 : f32
    %326 = vector.broadcast %cst_194 : f32 to vector<1x1xf32>
    %327 = arith.subf %326, %323 : vector<1x1xf32>
    %328 = vector.broadcast %327 : vector<1x1xf32> to vector<8x32xf32>
    %329 = arith.mulf %328, %2 : vector<8x32xf32>
    %330 = arith.addf %325, %329 : vector<8x32xf32>
    %c0_195 = arith.constant 0 : index
    %c0_196 = arith.constant 0 : index
    %331 = vector.load %arg17[%c0_195, %c0_196] : memref<8x32xf32, #tpu.memory_space<vmem>>, vector<8x32xf32>
    tpu.vector_store %arg17[%c0_195, %c0_196], %330 {strides = array<i32>} : memref<8x32xf32, #tpu.memory_space<vmem>>, vector<8x32xf32>,
    return
  }
}

</mosaic_0001>

<bundles_post_ra>
// kernel: tpu_custom_call.1
= control target key start
LH: loop header
LB: loop body
LE: loop exit
PB: predicated region body
PF: predicated region fallthrough
CT: control target
= control target key end

     0   :  { %s3504_s0 = inlined_call_operand.hbm [shape: f32[16,32], index: 0, kind: input, shape index: {}]   ;;  %s3505_s1 = inlined_call_operand.hbm [shape: f32[8,32], index: 1, kind: input, shape index: {}]   ;;  %s3506_s2 = inlined_call_operand.vmem [shape: f32[8,32], index: 2, kind: input, shape index: {}]   ;;  %s3507_s3 = inlined_call_operand.hbm [shape: f32[3,32,32], index: 3, kind: input, shape index: {}]   ;;  %s3508_s4 = inlined_call_operand.hbm [shape: f32[3,1,32], index: 4, kind: input, shape index: {}]   ;;  %s3509_s5 = inlined_call_operand.hbm [shape: f32[3,32,32], index: 5, kind: input, shape index: {}]   ;;  %s3510_s6 = inlined_call_operand.hbm [shape: f32[3,1,32], index: 6, kind: input, shape index: {}]   ;;  %s3511_s7 = inlined_call_operand.vmem [shape: f32[3,1,1], index: 7, kind: input, shape index: {}]   ;;  %s3512_s8 = inlined_call_operand.hbm [shape: f32[4,32,32], index: 8, kind: input, shape index: {}]   ;;  %s3513_s9 = inlined_call_operand.hbm [shape: f32[4,1,32], index: 9, kind: input, shape index: {}]   ;;  %s3514_s10 = inlined_call_operand.hbm [shape: f32[4,32,32], index: 10, kind: input, shape index: {}]   ;;  %s3515_s11 = inlined_call_operand.vmem [shape: f32[4,1,32], index: 11, kind: input, shape index: {}]   ;;  %s3516_s12 = inlined_call_operand.vmem [shape: f32[16,24], index: 12, kind: input, shape index: {}]   ;;  %s3517_s13 = inlined_call_operand.vmem [shape: f32[8,16], index: 13, kind: input, shape index: {}]   ;;  %s3518_s14 = inlined_call_operand.vmem [shape: f32[8,16], index: 14, kind: input, shape index: {}]   ;;  %s3519_s15 = inlined_call_operand.hbm [shape: f32[16,32], index: 15, kind: output, shape index: {0}]   ;;  %s3520_s16 = inlined_call_operand.hbm [shape: f32[8,32], index: 16, kind: output, shape index: {1}]   ;;  %s3521_s17 = inlined_call_operand.hbm [shape: f32[8,32], index: 17, kind: output, shape index: {2}]  }
   0x1   :  { %3525 = sst [smem:[#allocation28_spill]] %s3504_s0 }
   0x2   :  { %3526 = sst [smem:[#allocation29_spill]] %s3505_s1 }
   0x3   :  { %3527 = sst [smem:[#allocation30_spill]] %s3521_s17 }
   0x4   :  { %23 = vsyncpa [#allocation3], 0 }
   0x5   :  { %24 = vsyncpa [#allocation6], 0 }
   0x6   :  { %25 = vsyncpa [#allocation9], 0 }
   0x7   :  { %26 = vsyncpa [#allocation12], 0 }
   0x8   :  { %27 = vsyncpa [#allocation15], 0 }
   0x9   :  { %28 = vsyncpa [#allocation4], 0 }
   0xa   :  { %29 = vsyncpa [#allocation19], 0  ;;  %s3021_s24 = smov [#allocation5]   ;;  %s3022_s26 = smov [#allocation8]  }
   0xb   :  { %s48_s25 = sshll.u32 %s3021_s24, 4  ;;  %s71_s27 = sshll.u32 %s3022_s26, 4  ;;  %s49_s25 = int_to_ptr.vmem [resolvable:$true] %s48_s25  ;;  %s3131_s27 = int_to_ptr.vmem [resolvable:$true] %s71_s27 }
   0xc   :  { %s3528_s0 = sld [smem:[#allocation29_spill]] }
  0x12   :  { %s2743_s30 = scalar_lea.hbm %s3528_s0, 128 }
  0x13   :  { %p2744_p0 = scmp.ne.s32.totalorder %s3528_s0, %s2743_s30  ;;  %p2747_p1 = scmp.lt.u32.totalorder %s2743_s30, %s3528_s0 }
  0x15   :  { %p2749_p2 = pnand %p2747_p1, %p2744_p0 }
  0x17   :  { %2752 = shalt.err (!%p2749_p2)
}
  0x18   :  { %s2753_s21 = scalar_lea.vmem %s49_s25, 128  ;;  %p2758_p4 = scmp.lt.s32.totalorder %s49_s25, %s49_s25 }
  0x19   :  { %p2754_p3 = scmp.ne.s32.totalorder %s49_s25, %s2753_s21  ;;  %p2759_p5 = scmp.lt.s32.totalorder %s2753_s21, %s2753_s21 }
  0x1b   :  { %p2760_p6 = por %p2759_p5, %p2758_p4 }
  0x1d   :  { %p2761_p7 = pnand %p2760_p6, %p2754_p3 }
  0x1f   :  { %2764 = shalt.err (!%p2761_p7)
}
  0x20   :  { %51 = dma.hbm_to_vmem [thread:$0]  %s3528_s0, 128, %s49_s25, [#allocation6]  }
  0x21   :  { %s2765_s28 = scalar_lea.hbm %s3508_s4, 48 }
  0x22   :  { %p2766_p8 = scmp.ne.s32.totalorder %s3508_s4, %s2765_s28  ;;  %p2769_p9 = scmp.lt.u32.totalorder %s2765_s28, %s3508_s4 }
  0x24   :  { %p2771_p10 = pnand %p2769_p9, %p2766_p8 }
  0x26   :  { %2774 = shalt.err (!%p2771_p10)
}
  0x27   :  { %s2775_s1 = scalar_lea.vmem %s3131_s27, 48  ;;  %s2779_s25 = scalar_lea.vmem %s3131_s27, 64 }
  0x28   :  { %p2776_p11 = scmp.ne.s32.totalorder %s3131_s27, %s2775_s1  ;;  %p2780_p12 = scmp.lt.s32.totalorder %s3131_s27, %s3131_s27 }
  0x29   :  { %p2781_p13 = scmp.lt.s32.totalorder %s2779_s25, %s2775_s1 }
  0x2b   :  { %p2782_p0 = por %p2781_p13, %p2780_p12 }
  0x2d   :  { %p2783_p1 = pnand %p2782_p0, %p2776_p11 }
  0x2f   :  { %2786 = shalt.err (!%p2783_p1)
}
  0x30   :  { %s3023_s0 = smov 16   ;;  %s3024_s20 = smov 1  }
  0x31   :  { %77 = dma.hbm_to_vmem [thread:$0]  %s3508_s4, 48, %s3131_s27, [#allocation9], %s3023_s0, %s3023_s0, %s3024_s20  }
  0x32   :  { %s3025_s23 = smov [#allocation11]   ;;  %s3026_s26 = smov [#allocation14]  }
  0x33   :  { %s95_s24 = sshll.u32 %s3025_s23, 4  ;;  %s121_s28 = sshll.u32 %s3026_s26, 4  ;;  %s96_s24 = int_to_ptr.vmem [resolvable:$true] %s95_s24  ;;  %s3166_s28 = int_to_ptr.vmem [resolvable:$true] %s121_s28 }
  0x34   :  { %s2787_s30 = scalar_lea.hbm %s3510_s6, 48 }
  0x35   :  { %p2788_p2 = scmp.ne.s32.totalorder %s3510_s6, %s2787_s30  ;;  %p2791_p3 = scmp.lt.u32.totalorder %s2787_s30, %s3510_s6 }
  0x37   :  { %p2793_p4 = pnand %p2791_p3, %p2788_p2 }
  0x39   :  { %2796 = shalt.err (!%p2793_p4)
}
  0x3a   :  { %s2797_s4 = scalar_lea.vmem %s96_s24, 48  ;;  %s2801_s27 = scalar_lea.vmem %s96_s24, 64 }
  0x3b   :  { %p2798_p5 = scmp.ne.s32.totalorder %s96_s24, %s2797_s4  ;;  %p2802_p6 = scmp.lt.s32.totalorder %s96_s24, %s96_s24 }
  0x3c   :  { %p2803_p7 = scmp.lt.s32.totalorder %s2801_s27, %s2797_s4 }
  0x3e   :  { %p2804_p8 = por %p2803_p7, %p2802_p6 }
  0x40   :  { %p2805_p9 = pnand %p2804_p8, %p2798_p5 }
  0x42   :  { %2808 = shalt.err (!%p2805_p9)
}
  0x43   :  { %101 = dma.hbm_to_vmem [thread:$0]  %s3510_s6, 48, %s96_s24, [#allocation12], %s3023_s0, %s3023_s0, %s3024_s20  }
  0x44   :  { %s2809_s26 = scalar_lea.hbm %s3513_s9, 64 }
  0x45   :  { %p2810_p10 = scmp.ne.s32.totalorder %s3513_s9, %s2809_s26  ;;  %p2813_p11 = scmp.lt.u32.totalorder %s2809_s26, %s3513_s9 }
  0x47   :  { %p2815_p12 = pnand %p2813_p11, %p2810_p10 }
  0x49   :  { %2818 = shalt.err (!%p2815_p12)
}
  0x4a   :  { %s2819_s1 = scalar_lea.vmem %s3166_s28, 64  ;;  %p2824_p0 = scmp.lt.s32.totalorder %s3166_s28, %s3166_s28 }
  0x4b   :  { %p2820_p13 = scmp.ne.s32.totalorder %s3166_s28, %s2819_s1  ;;  %p2825_p1 = scmp.lt.s32.totalorder %s2819_s1, %s2819_s1 }
  0x4d   :  { %p2826_p2 = por %p2825_p1, %p2824_p0 }
  0x4f   :  { %p2827_p3 = pnand %p2826_p2, %p2820_p13 }
  0x51   :  { %2830 = shalt.err (!%p2827_p3)
}
  0x52   :  { %127 = dma.hbm_to_vmem [thread:$0]  %s3513_s9, 64, %s3166_s28, [#allocation15], %s3023_s0, %s3023_s0, %s3024_s20  }
  0x53   :  { %s3027_s25 = smov [#allocation2]   ;;  %s3529_s22 = sld [smem:[#allocation28_spill]] }
  0x54   :  { %s35_s4 = sshll.u32 %s3027_s25, 4  ;;  %s36_s4 = int_to_ptr.vmem [resolvable:$true] %s35_s4 }
  0x59   :  { %s2831_s23 = scalar_lea.hbm %s3529_s22, 256 }
  0x5a   :  { %p2832_p4 = scmp.ne.s32.totalorder %s3529_s22, %s2831_s23  ;;  %p2835_p5 = scmp.lt.u32.totalorder %s2831_s23, %s3529_s22 }
  0x5c   :  { %p2837_p6 = pnand %p2835_p5, %p2832_p4 }
  0x5e   :  { %2840 = shalt.err (!%p2837_p6)
}
  0x5f   :  { %s2841_s30 = scalar_lea.vmem %s36_s4, 256  ;;  %p2846_p8 = scmp.lt.s32.totalorder %s36_s4, %s36_s4 }
  0x60   :  { %p2842_p7 = scmp.ne.s32.totalorder %s36_s4, %s2841_s30  ;;  %p2847_p9 = scmp.lt.s32.totalorder %s2841_s30, %s2841_s30 }
  0x62   :  { %p2848_p10 = por %p2847_p9, %p2846_p8 }
  0x64   :  { %p2849_p11 = pnand %p2848_p10, %p2842_p7 }
  0x66   :  { %2852 = shalt.err (!%p2849_p11)
}
  0x67   :  { %s3028_s9 = smov 128   ;;  %s3029_s0 = smov 8  }
  0x68   :  { %41 = dma.hbm_to_vmem [thread:$0]  %s3529_s22, 256, %s36_s4, [#allocation3], %s3028_s9, %s3028_s9, %s3029_s0  }
  0x69   :  { %s3030_s19 = smov [#allocation7]   ;;  %s3031_s6 = smov [#allocation10]  }
  0x6a   :  { %s59_s1 = sshll.u32 %s3030_s19, 4  ;;  %s83_s24 = sshll.u32 %s3031_s6, 4  ;;  %s60_s1 = int_to_ptr.vmem [resolvable:$true] %s59_s1  ;;  %s84_s24 = int_to_ptr.vmem [resolvable:$true] %s83_s24 }
  0x6b   :  { %s2853_s21 = scalar_lea.hbm %s3507_s3, 1536 }
  0x6c   :  { %p2854_p12 = scmp.ne.s32.totalorder %s3507_s3, %s2853_s21  ;;  %p2857_p13 = scmp.lt.u32.totalorder %s2853_s21, %s3507_s3 }
  0x6e   :  { %p2859_p0 = pnand %p2857_p13, %p2854_p12 }
  0x70   :  { %2862 = shalt.err (!%p2859_p0)
}
  0x71   :  { %s2863_s4 = scalar_lea.vmem %s60_s1, 1536  ;;  %p2868_p2 = scmp.lt.s32.totalorder %s60_s1, %s60_s1 }
  0x72   :  { %p2864_p1 = scmp.ne.s32.totalorder %s60_s1, %s2863_s4  ;;  %p2869_p3 = scmp.lt.s32.totalorder %s2863_s4, %s2863_s4 }
  0x74   :  { %p2870_p4 = por %p2869_p3, %p2868_p2 }
  0x76   :  { %p2871_p5 = pnand %p2870_p4, %p2864_p1 }
  0x78   :  { %2874 = shalt.err (!%p2871_p5)
}
  0x79   :  { %65 = dma.hbm_to_vmem [thread:$0]  %s3507_s3, 1536, %s60_s1, [#allocation6], %s3028_s9, %s3028_s9, %s3029_s0  }
  0x7a   :  { %s2875_s28 = scalar_lea.hbm %s3509_s5, 1536 }
  0x7b   :  { %p2876_p6 = scmp.ne.s32.totalorder %s3509_s5, %s2875_s28  ;;  %p2879_p7 = scmp.lt.u32.totalorder %s2875_s28, %s3509_s5 }
  0x7d   :  { %p2881_p8 = pnand %p2879_p7, %p2876_p6 }
  0x7f   :  { %2884 = shalt.err (!%p2881_p8)
}
  0x80   :  { %s2885_s21 = scalar_lea.vmem %s84_s24, 1536  ;;  %p2890_p10 = scmp.lt.s32.totalorder %s84_s24, %s84_s24 }
  0x81   :  { %p2886_p9 = scmp.ne.s32.totalorder %s84_s24, %s2885_s21  ;;  %p2891_p11 = scmp.lt.s32.totalorder %s2885_s21, %s2885_s21 }
  0x83   :  { %p2892_p12 = por %p2891_p11, %p2890_p10 }
  0x85   :  { %p2893_p13 = pnand %p2892_p12, %p2886_p9 }
  0x87   :  { %2896 = shalt.err (!%p2893_p13)
}
  0x88   :  { %89 = dma.hbm_to_vmem [thread:$0]  %s3509_s5, 1536, %s84_s24, [#allocation9], %s3028_s9, %s3028_s9, %s3029_s0  }
  0x89   :  { %s3032_s23 = smov [#allocation13]   ;;  %s3033_s26 = smov [#allocation16]  }
  0x8a   :  { %s109_s17 = sshll.u32 %s3032_s23, 4  ;;  %s133_s29 = sshll.u32 %s3033_s26, 4  ;;  %s110_s17 = int_to_ptr.vmem [resolvable:$true] %s109_s17  ;;  %s134_s29 = int_to_ptr.vmem [resolvable:$true] %s133_s29 }
  0x8b   :  { %s2897_s18 = scalar_lea.hbm %s3512_s8, 2048 }
  0x8c   :  { %p2898_p0 = scmp.ne.s32.totalorder %s3512_s8, %s2897_s18  ;;  %p2901_p1 = scmp.lt.u32.totalorder %s2897_s18, %s3512_s8 }
  0x8e   :  { %p2903_p2 = pnand %p2901_p1, %p2898_p0 }
  0x90   :  { %2906 = shalt.err (!%p2903_p2)
}
  0x91   :  { %s2907_s5 = scalar_lea.vmem %s110_s17, 2048  ;;  %p2912_p4 = scmp.lt.s32.totalorder %s110_s17, %s110_s17 }
  0x92   :  { %p2908_p3 = scmp.ne.s32.totalorder %s110_s17, %s2907_s5  ;;  %p2913_p5 = scmp.lt.s32.totalorder %s2907_s5, %s2907_s5 }
  0x94   :  { %p2914_p6 = por %p2913_p5, %p2912_p4 }
  0x96   :  { %p2915_p7 = pnand %p2914_p6, %p2908_p3 }
  0x98   :  { %2918 = shalt.err (!%p2915_p7)
}
  0x99   :  { %115 = dma.hbm_to_vmem [thread:$0]  %s3512_s8, 2048, %s110_s17, [#allocation12], %s3028_s9, %s3028_s9, %s3029_s0  }
  0x9a   :  { %s2919_s21 = scalar_lea.hbm %s3514_s10, 2048 }
  0x9b   :  { %p2920_p8 = scmp.ne.s32.totalorder %s3514_s10, %s2919_s21  ;;  %p2923_p9 = scmp.lt.u32.totalorder %s2919_s21, %s3514_s10 }
  0x9d   :  { %p2925_p10 = pnand %p2923_p9, %p2920_p8 }
  0x9f   :  { %2928 = shalt.err (!%p2925_p10)
}
  0xa0   :  { %s2929_s4 = scalar_lea.vmem %s134_s29, 2048  ;;  %p2934_p12 = scmp.lt.s32.totalorder %s134_s29, %s134_s29 }
  0xa1   :  { %p2930_p11 = scmp.ne.s32.totalorder %s134_s29, %s2929_s4  ;;  %p2935_p13 = scmp.lt.s32.totalorder %s2929_s4, %s2929_s4 }
  0xa3   :  { %p2936_p0 = por %p2935_p13, %p2934_p12 }
  0xa5   :  { %p2937_p1 = pnand %p2936_p0, %p2930_p11 }
  0xa7   :  { %2940 = shalt.err (!%p2937_p1)
}
  0xa8   :  { %139 = dma.hbm_to_vmem [thread:$0]  %s3514_s10, 2048, %s134_s29, [#allocation15], %s3028_s9, %s3028_s9, %s3029_s0  }
  0xa9   :  { %3007 = dma.done.wait [#allocation3], 256  }
  0xaa   :  { %3008 = vsyncadd [#allocation3], 4294967040 }
  0xab   :  { %3009 = dma.done.wait [#allocation6], 1664  }
  0xac   :  { %3010 = vsyncadd [#allocation6], 4294965632 }
  0xad   :  { %3011 = dma.done.wait [#allocation9], 1584  }
  0xae   :  { %3012 = vsyncadd [#allocation9], 4294965712 }
  0xaf   :  { %3013 = dma.done.wait [#allocation12], 2096  }
  0xb0   :  { %3014 = vsyncadd [#allocation12], 4294965200 }
  0xb1   :  { %3015 = dma.done.wait [#allocation15], 2112  }
  0xb2   :  { %3016 = vsyncadd [#allocation15], 4294965184  ;;  %vm190_vm0 = vcmask 261120   ;;  %v272_v0 = vld [vmem:[#allocation13] sm:$0xff]  ;;  %v273_v1 = vld [vmem:[#allocation13 + $0x8] sm:$0xff]  ;;  %v3034_v17 = vmov 0.0|0.0  }
  0xb3   :  { %v274_v2 = vld [vmem:[#allocation13 + $0x10] sm:$0xff]  ;;  %v2561_v3 = vpack.c.bf16 %v273_v1, %v272_v0  ;;  %v275_v4 = vld [vmem:[#allocation13 + $0x18] sm:$0xff]  ;;  %v3278_v5 = vld [vmem:[#allocation2] sm:$0xff]  ;;  %vm3035_vm1 = vmmov 0   ;;  %v3036_v21 = vmov 0.0   ;;  %vm709_vm4 = vcmask 195584  }
  0xb4   :  { %v2565_v6 = vpack.c.bf16 %v275_v4, %v274_v2  ;;  %2372 = vmatprep.mubr.msk.f32.mxu1 %vm190_vm0, %v3278_v5  ;;  %v179_v7 = vld [vmem:[#allocation7] sm:$0xff]  ;;  %2361 = vmatprep.mubr.msk.f32.mxu0 %vm190_vm0, %v3278_v5  ;;  %v180_v8 = vld [vmem:[#allocation7 + $0x8] sm:$0xff]  ;;  %v181_v10 = vld [vmem:[#allocation7 + $0x10] sm:$0xff]  ;;  %vm1340_vm9 = vcmask 130048   ;;  %s3039_s17 = smov [#allocation17]  }
  0xb5   :  { %2562 = vmatprep.subr.bf16.mxu1 %v2561_v3  ;;  %v2553_v9 = vpack.c.bf16 %v180_v8, %v179_v7  ;;  %v182_v11 = vld [vmem:[#allocation7 + $0x18] sm:$0xff]  ;;  %v445_v12 = vld [vmem:[#allocation13 + $0x20] sm:$0xff]  ;;  %v446_v13 = vld [vmem:[#allocation13 + $0x28] sm:$0xff]  ;;  %s2151_s10 = sshll.u32 %s3039_s17, 4  ;;  %s2152_s10 = int_to_ptr.vmem [resolvable:$true] %s2151_s10 }
  0xb6   :  { %2564 = vmatpush3.bf16.msra.mxu1 %v2561_v3  ;;  %v2557_v14 = vpack.c.bf16 %v182_v11, %v181_v10  ;;  %v3284_v15 = vld [vmem:[#allocation2 + $0x8] sm:$0xff]  ;;  %v2578_v16 = vpack.c.bf16 %v446_v13, %v445_v12  ;;  %v447_v18 = vld [vmem:[#allocation13 + $0x30] sm:$0xff]  ;;  %v448_v19 = vld [vmem:[#allocation13 + $0x38] sm:$0xff] }
  0xb7   :  { %2566 = vmatprep.subr.bf16.mxu1 %v2565_v6  ;;  %2554 = vmatprep.subr.bf16.mxu0 %v2553_v9  ;;  %v2581_v20 = vpack.c.bf16 %v448_v19, %v447_v18  ;;  %v3296_v22 = vld [vmem:[#allocation5] sm:$0xff]  ;;  %v2197_v23 = vld [vmem:[#allocation14] ss:$0 sm:$0xff]  ;;  %v2194_v28 = vld [vmem:[#allocation8] ss:$0 sm:$0xff] }
  0xb8   :  { %2556 = vmatpush3.bf16.msra.mxu0 %v2553_v9  ;;  %vm3302_vm2 = vmpackc.low %vm190_vm0, %vm190_vm0  ;;  %v2203_v34 = vld [vmem:[#allocation14 + $0x1] ss:$0 sm:$0xff]  ;;  %v358_v39 = vld [vmem:[#allocation16] sm:$0xff] }
  0xb9   :  { %2558 = vmatprep.subr.bf16.mxu0 %v2557_v14  ;;  %v359_v40 = vld [vmem:[#allocation16 + $0x8] sm:$0xff]  ;;  %v360_v41 = vld [vmem:[#allocation16 + $0x10] sm:$0xff]  ;;  %v361_v43 = vld [vmem:[#allocation16 + $0x18] sm:$0xff] }
  0xba   :  { %2568 = vmatpush3.bf16.msra.mxu1 %v2565_v6  ;;  %v2569_v42 = vpack.c.bf16 %v359_v40, %v358_v39  ;;  %v2573_v44 = vpack.c.bf16 %v361_v43, %v360_v41  ;;  %v531_v45 = vld [vmem:[#allocation16 + $0x20] sm:$0xff]  ;;  %v532_v46 = vld [vmem:[#allocation16 + $0x28] sm:$0xff]  ;;  %v533_v48 = vld [vmem:[#allocation16 + $0x30] sm:$0xff] }
  0xbb   :  { %2577 = vmatprep.subr.bf16.mxu1 %v3034_v17  ;;  %v2584_v47 = vpack.c.bf16 %v532_v46, %v531_v45  ;;  %v534_v49 = vld [vmem:[#allocation16 + $0x38] sm:$0xff]  ;;  %v704_v52 = vld [vmem:[%s3516_s12 + $0x8] sm:$0xff] }
  0xbc   :  { %2560 = vmatpush3.bf16.msra.mxu0 %v2557_v14  ;;  %v2587_v50 = vpack.c.bf16 %v534_v49, %v533_v48  ;;  %v703_v51 = vld [vmem:[%s3516_s12] sm:$0xff]  ;;  %vm706_vm5 = vcmp.gt.f32.partialorder %v704_v52, 0.0  ;;  %v1000_v40 = vld [vmem:[#allocation7 + $0x20] sm:$0xff]  ;;  %v1002_v43 = vld [vmem:[#allocation7 + $0x30] sm:$0xff] }
  0xbd   :  { %2373 = vmatmul.mubr.msk.f32.vlgmr.msra.gmra.mrb[0].mxu1 %vm190_vm0, %v3284_v15  ;;  %2570 = vmatprep.subr.bf16.mxu0 %v2569_v42  ;;  %vm705_vm3 = vcmp.gt.f32.partialorder %v703_v51, 0.0  ;;  %v2200_v9 = vld [vmem:[%s3515_s11] ss:$0 sm:$0xff]  ;;  %v2206_v11 = vld [vmem:[%s3515_s11 + $0x1] ss:$0 sm:$0xff] }
  0xbe   :  { %2579 = vmatpush3.bf16.msra.mxu1 %v2578_v16  ;;  %2394 = vmatprep.mubr.msk.f32.mxu1 %vm3035_vm1, %v3036_v21  ;;  %v1001_v41 = vld [vmem:[#allocation7 + $0x28] sm:$0xff] }
  0xbf   :  { %2580 = vmatprep.subr.bf16.mxu1 %v3034_v17  ;;  %2362 = vmatmul.mubr.msk.f32.vlgmr.msra.gmra.mrb[0].mxu0 %vm190_vm0, %v3284_v15  ;;  %v963_v29 = vld [vmem:[%s3511_s7] sm:$0x1] }
  0xc0   :  { %2383 = vmatprep.mubr.msk.f32.mxu0 %vm190_vm0, %v3278_v5  ;;  %2572 = vmatpush3.bf16.msra.mxu0 %v2569_v42  ;;  %v2608_v42 = vpack.c.bf16 %v1001_v41, %v1000_v40 }
  0xc1   :  { %2574 = vmatprep.subr.bf16.mxu0 %v2573_v44 }
  0xc2   :  { %2582 = vmatpush3.bf16.msra.mxu1 %v2581_v20 }
  0xc4   :  { %2576 = vmatpush3.bf16.msra.mxu0 %v2573_v44  ;;  %v1003_v44 = vld [vmem:[#allocation7 + $0x38] sm:$0xff] }
  0xc5   :  { %2395 = vmatmul.mubr.msk.f32.vlgmr.msra.gmra.mrb[2].mxu1 %vm190_vm0, %v3296_v22  ;;  %2583 = vmatprep.subr.bf16.mxu0 %v3034_v17  ;;  %v2611_v45 = vpack.c.bf16 %v1003_v44, %v1002_v43 }
  0xc7   :  { %2384 = vmatmul.mubr.msk.f32.vlgmr.msra.gmra.mrb[2].mxu0 %vm190_vm0, %v3284_v15 }
  0xc8   :  { %2585 = vmatpush3.bf16.msra.mxu0 %v2584_v47  ;;  %2405 = vmatprep.mubr.msk.f32.mxu0 %vm3035_vm1, %v3036_v21 }
  0xc9   :  { %2586 = vmatprep.subr.bf16.mxu0 %v3034_v17 }
  0xcc   :  { %2588 = vmatpush3.bf16.msra.mxu0 %v2587_v50 }
  0xcf   :  { %2406 = vmatmul.mubr.msk.f32.vlgmr.msra.gmra.mrb[4].mxu0 %vm190_vm0, %v3296_v22 }
 0x190   :  { %v2374_v24 = vpop.f32.mrb[0].mxu1 }
 0x191   :  { %v355_v25 = vadd.f32 %v2374_v24, %v2197_v23  ;;  %v349_v26 = vpop.f32.mrb[1].mxu1 }
 0x192   :  { %v350_v27 = vadd.f32 %v2197_v23, %v349_v26  ;;  %v2363_v30 = vpop.f32.mrb[0].mxu0 }
 0x193   :  { %v263_v32 = vpop.f32.mrb[1].mxu0  ;;  %v269_v38 = vadd.f32 %v2363_v30, %v2194_v28 }
 0x194   :  { %v2589_v31 = vpack.c.bf16 %v355_v25, %v350_v27  ;;  %v264_v33 = vadd.f32 %v2194_v28, %v263_v32  ;;  %v872_v32 = vld [vmem:[#allocation10 + $0x8] sm:$0xff] }
 0x196   :  { %2591 = vmatprep.subr.msk.bf16.mxu1 %vm3302_vm2, %v2589_v31  ;;  %2414 = vmatprep.mubr.msk.f32.mxu1 %vm190_vm0, %v264_v33 }
 0x197   :  { %2594 = vmatpush3.bf16.xpose.msk.msra.mxu1 %vm3302_vm2, %v2589_v31  ;;  %v871_v31 = vld [vmem:[#allocation10] sm:$0xff] }
 0x198   :  { %v526_v35 = vpop.f32.mrb[2].mxu1  ;;  %v2599_v33 = vpack.c.bf16 %v872_v32, %v871_v31 }
 0x199   :  { %v527_v36 = vadd.f32 %v2203_v34, %v526_v35  ;;  %v2396_v37 = vpop.f32.mrb[3].mxu1  ;;  %v873_v34 = vld [vmem:[#allocation10 + $0x10] sm:$0xff]  ;;  %v874_v35 = vld [vmem:[#allocation10 + $0x18] sm:$0xff] }
 0x19a   :  { %v2385_v8 = vpop.f32.mrb[2].mxu0  ;;  %v1083_v37 = vld [vmem:[#allocation13 + $0x40] sm:$0xff] }
 0x19b   :  { %2412 = vmatprep.subr.msk.mxu1 %vm190_vm0, %v527_v36  ;;  %v435_v10 = vpop.f32.mrb[3].mxu0  ;;  %v441_v12 = vadd.f32 %v2385_v8, %v2200_v9 }
 0x19c   :  { %v436_v13 = vadd.f32 %v2200_v9, %v435_v10 }
 0x19e   :  { %v2595_v18 = vpack.c.bf16 %v441_v12, %v436_v13 }
 0x19f   :  { %2413 = vmatpush3.xpose.msk.msra.mxu1 %vm190_vm0, %v527_v36  ;;  %v2603_v36 = vpack.c.bf16 %v874_v35, %v873_v34 }
 0x1a0   :  { %2596 = vmatprep.subr.bf16.mxu0 %v2595_v18  ;;  %2600 = vmatprep.subr.bf16.mxu1 %v2599_v33 }
 0x1a1   :  { %2598 = vmatpush3.bf16.msra.mxu0 %v2595_v18 }
 0x1a2   :  { %2415 = vmatmul.mubr.msk.f32.vlgmr.msra.gmra.mrb[4].mxu1 %vm190_vm0, %v269_v38  ;;  %v609_v14 = vpop.f32.mrb[4].mxu0  ;;  %v1084_v38 = vld [vmem:[#allocation13 + $0x48] sm:$0xff] }
 0x1a3   :  { %v2407_v16 = vpop.f32.mrb[5].mxu0  ;;  %v610_v19 = vadd.f32 %v2206_v11, %v609_v14  ;;  %2602 = vmatpush3.bf16.msra.mxu1 %v2599_v33  ;;  %v3347_v39 = vpack.c.bf16 %v1084_v38, %v1083_v37  ;;  %v1085_v37 = vld [vmem:[#allocation13 + $0x50] sm:$0xff]  ;;  %v1086_v38 = vld [vmem:[#allocation13 + $0x58] sm:$0xff] }
 0x1a4   :  { %2604 = vmatprep.subr.bf16.mxu1 %v2603_v36  ;;  %v2617_v43 = vpack.c.bf16 %v1086_v38, %v1085_v37  ;;  %v1576_v37 = vld [vmem:[#allocation7 + $0x58] sm:$0xff] }
 0x1a5   :  { %2421 = vmatprep.subr.mxu0 %v610_v19 }
 0x1a6   :  { %2422 = vmatpush3.msra.mxu0 %v610_v19 }
 0x1a7   :  { %2607 = vmatprep.subr.bf16.mxu0 %v3034_v17  ;;  %2606 = vmatpush3.bf16.msra.mxu1 %v2603_v36 }
 0x1a8   :  { %2614 = vmatprep.subr.bf16.mxu1 %v3347_v39 }
 0x275   :  { %v2416_v53 = vpop.f32.mrb[4].mxu1 }
 0x276   :  { %v694_v54 = vpop.f32.mrb[5].mxu1  ;;  %v708_v57 = vsel %vm706_vm5, %v2416_v53, -1e+30 }
 0x277   :  { %v707_v55 = vsel %vm705_vm3, %v694_v54, -1e+30  ;;  %v713_v58 = vsel %vm709_vm4, %v708_v57, -inf }
 0x278   :  { %v710_v56 = vsel %vm709_vm4, %v707_v55, -inf }
 0x279   :  { %711 = vmax.xlane.f32.xlu0 %v710_v56 }
 0x27d   :  { %714 = vmax.xlane.f32.xlu0 %v713_v58 }
 0x306   :  { %v712_v59 = vpop.xlane.xlu0 %711 }
 0x307   :  { %v716_v60 = vsub.f32 %v707_v55, %v712_v59 }
 0x309   :  { %v718_v61 = vmul.f32 1.442695, %v716_v60 }
 0x30a   :  { %v715_v62 = vpop.xlane.xlu0 %714 }
 0x30b   :  { %2699 = vpow2.f32 %v718_v61  ;;  %v717_v63 = vsub.f32 %v708_v57, %v715_v62 }
 0x30d   :  { %v720_v0 = vmul.f32 1.442695, %v717_v63 }
 0x30f   :  { %2701 = vpow2.f32 %v720_v0 }
 0x315   :  { %v2700_v1 = vpop.eup %2699 }
 0x316   :  { %v722_v2 = vsel %vm705_vm3, %v2700_v1, 0.0 }
 0x317   :  { %v724_v3 = vsel %vm709_vm4, %v722_v2, 0.0 }
 0x318   :  { %725 = vadd.xlane.f32.xlu1 %v724_v3 }
 0x319   :  { %v2702_v4 = vpop.eup %2701 }
 0x31a   :  { %v723_v6 = vsel %vm706_vm5, %v2702_v4, 0.0 }
 0x31b   :  { %v727_v7 = vsel %vm709_vm4, %v723_v6, 0.0 }
 0x31c   :  { %728 = vadd.xlane.f32.xlu1 %v727_v7 }
 0x3a5   :  { %v726_v20 = vpop.xlane.xlu1 %725 }
 0x3a6   :  { %v730_v23 = vmax.f32 %v726_v20, 1e-09 }
 0x3a8   :  { %2703 = vrcp.f32 %v730_v23 }
 0x3a9   :  { %v729_v24 = vpop.xlane.xlu1 %728 }
 0x3aa   :  { %v731_v25 = vmax.f32 %v729_v24, 1e-09 }
 0x3ac   :  { %2705 = vrcp.f32 %v731_v25 }
 0x3b2   :  { %v2704_v26 = vpop.eup %2703 }
 0x3b3   :  { %v733_v27 = vmul.f32 %v2704_v26, %v722_v2 }
 0x3b5   :  { %2423 = vmatprep.mubr.msk.f32.mxu0 %vm709_vm4, %v733_v27 }
 0x3b6   :  { %v2706_v28 = vpop.eup %2705 }
 0x3b7   :  { %v735_v30 = vmul.f32 %v2706_v28, %v723_v6 }
 0x3b9   :  { %2424 = vmatmul.mubr.msk.f32.vlgmr.msra.gmra.mrb[6].mxu0 %vm709_vm4, %v735_v30 }
 0x3ba   :  { %2445 = vmatprep.mubr.msk.f32.mxu0 %vm3035_vm1, %v3036_v21  ;;  %2609 = vmatpush3.bf16.msra.mxu0 %v2608_v42 }
 0x3bb   :  { %2610 = vmatprep.subr.bf16.mxu0 %v3034_v17 }
 0x3be   :  { %2612 = vmatpush3.bf16.msra.mxu0 %v2611_v45 }
 0x3c1   :  { %2446 = vmatmul.mubr.msk.f32.vlgmr.msra.gmra.mrb[8].mxu0 %vm190_vm0, %v3296_v22 }
 0x3c2   :  { %2467 = vmatprep.mubr.msk.f32.mxu0 %vm190_vm0, %v3278_v5 }
 0x48c   :  { %v2425_v46 = vpop.f32.mrb[6].mxu0 }
 0x48d   :  { %v820_v47 = vmul.f32 0.70710677, %v2425_v46  ;;  %v808_v48 = vpop.f32.mrb[7].mxu0  ;;  %v818_v40 = vmul.f32 0.5, %v2425_v46 }
 0x48e   :  { %v819_v49 = vmul.f32 0.70710677, %v808_v48  ;;  %v817_v35 = vmul.f32 0.5, %v808_v48 }
 0x48f   :  { %v822_v50 = vand.u32 2147483647, %v820_v47  ;;  %vm862_vm6 = vcmp.ge.f32.partialorder %v820_v47, 0.0 }
 0x490   :  { %v821_v51 = vand.u32 2147483647, %v819_v49  ;;  %vm861_vm7 = vcmp.ge.f32.partialorder %v819_v49, 0.0 }
 0x491   :  { %v824_v52 = vmul.f32 0.3275911, %v822_v50  ;;  %v850_v56 = vsub.f32 0.0, %v822_v50 }
 0x492   :  { %v823_v53 = vmul.f32 0.3275911, %v821_v51  ;;  %v849_v57 = vsub.f32 0.0, %v821_v51 }
 0x493   :  { %v826_v54 = vadd.f32 1.0, %v824_v52  ;;  %v852_v59 = vmul.f32 %v850_v56, %v822_v50  ;;  %v1172_v56 = vld [vmem:[#allocation16 + $0x48] sm:$0xff] }
 0x494   :  { %v825_v55 = vadd.f32 1.0, %v823_v53  ;;  %v851_v62 = vmul.f32 %v849_v57, %v821_v51  ;;  %v1078_v44 = vpop.f32.mrb[8].mxu0  ;;  %v2219_v53 = vld [vmem:[#allocation8 + $0x1] ss:$0 sm:$0xff] }
 0x495   :  { %2707 = vrcp.f32 %v826_v54  ;;  %v855_v1 = vmul.f32 1.442695, %v852_v59  ;;  %v2447_v45 = vpop.f32.mrb[9].mxu0  ;;  %v1079_v54 = vadd.f32 %v2219_v53, %v1078_v44  ;;  %v1173_v57 = vld [vmem:[#allocation16 + $0x50] sm:$0xff]  ;;  %v1174_v59 = vld [vmem:[#allocation16 + $0x58] sm:$0xff] }
 0x496   :  { %2709 = vrcp.f32 %v825_v55  ;;  %v853_v4 = vmul.f32 1.442695, %v851_v62  ;;  %v1171_v55 = vld [vmem:[#allocation16 + $0x40] sm:$0xff] }
 0x497   :  { %2711 = vpow2.f32 %v855_v1 }
 0x498   :  { %2713 = vpow2.f32 %v853_v4 }
 0x49f   :  { %v2708_v58 = vpop.eup %2707 }
 0x4a0   :  { %v2710_v60 = vpop.eup %2709  ;;  %v832_v61 = vmul.f32 1.0614054, %v2708_v58 }
 0x4a1   :  { %v831_v63 = vmul.f32 1.0614054, %v2710_v60  ;;  %v2712_v20 = vpop.eup %2711 }
 0x4a2   :  { %v834_v0 = vadd.f32 -1.4531521, %v832_v61  ;;  %v2714_v24 = vpop.eup %2713  ;;  %v1337_v61 = vld [vmem:[%s3517_s13] sm:$0xff] }
 0x4a3   :  { %v833_v2 = vadd.f32 -1.4531521, %v831_v63  ;;  %vm1338_vm8 = vcmp.gt.f32.partialorder %v1337_v61, 0.0 }
 0x4a4   :  { %v836_v3 = vmul.f32 %v2708_v58, %v834_v0 }
 0x4a5   :  { %v835_v6 = vmul.f32 %v2710_v60, %v833_v2 }
 0x4a6   :  { %v838_v7 = vadd.f32 1.4214138, %v836_v3 }
 0x4a7   :  { %v837_v8 = vadd.f32 1.4214138, %v835_v6 }
 0x4a8   :  { %v840_v9 = vmul.f32 %v2708_v58, %v838_v7 }
 0x4a9   :  { %v839_v10 = vmul.f32 %v2710_v60, %v837_v8 }
 0x4aa   :  { %v842_v11 = vadd.f32 -0.28449672, %v840_v9 }
 0x4ab   :  { %v841_v12 = vadd.f32 -0.28449672, %v839_v10  ;;  %v2225_v10 = vld [vmem:[%s3515_s11 + $0x2] ss:$0 sm:$0xff] }
 0x4ac   :  { %v844_v13 = vmul.f32 %v2708_v58, %v842_v11 }
 0x4ad   :  { %v843_v14 = vmul.f32 %v2710_v60, %v841_v12 }
 0x4ae   :  { %v846_v16 = vadd.f32 0.2548296, %v844_v13 }
 0x4af   :  { %v845_v18 = vadd.f32 0.2548296, %v843_v14 }
 0x4b0   :  { %v848_v19 = vmul.f32 %v2708_v58, %v846_v16  ;;  %v2621_v58 = vpack.c.bf16 %v1172_v56, %v1171_v55 }
 0x4b1   :  { %v847_v23 = vmul.f32 %v2710_v60, %v845_v18  ;;  %v2625_v60 = vpack.c.bf16 %v1174_v59, %v1173_v57 }
 0x4b2   :  { %v858_v25 = vmul.f32 %v2712_v20, %v848_v19  ;;  %2622 = vmatprep.subr.bf16.mxu0 %v2621_v58 }
 0x4b3   :  { %v857_v26 = vmul.f32 %v2714_v24, %v847_v23  ;;  %2624 = vmatpush3.bf16.msra.mxu0 %v2621_v58  ;;  %v1455_v23 = vld [vmem:[#allocation10 + $0x20] sm:$0xff]  ;;  %v1456_v24 = vld [vmem:[#allocation10 + $0x28] sm:$0xff] }
 0x4b4   :  { %v860_v27 = vsub.f32 1.0, %v858_v25  ;;  %2626 = vmatprep.subr.bf16.mxu0 %v2625_v60  ;;  %v2637_v25 = vpack.c.bf16 %v1456_v24, %v1455_v23  ;;  %v2236_v23 = vld [vmem:[#allocation8 + $0x2] ss:$0 sm:$0xff] }
 0x4b5   :  { %v859_v28 = vsub.f32 1.0, %v857_v26  ;;  %v1457_v26 = vld [vmem:[#allocation10 + $0x30] sm:$0xff] }
 0x4b6   :  { %v864_v30 = vsub.f32 0.0, %v860_v27 }
 0x4b7   :  { %v863_v31 = vsub.f32 0.0, %v859_v28  ;;  %2628 = vmatpush3.bf16.msra.mxu0 %v2625_v60 }
 0x4b8   :  { %v866_v32 = vsel %vm862_vm6, %v860_v27, %v864_v30  ;;  %2633 = vmatprep.subr.bf16.mxu0 %v3034_v17  ;;  %v1458_v27 = vld [vmem:[#allocation10 + $0x38] sm:$0xff]  ;;  %v1659_v30 = vld [vmem:[#allocation13 + $0x60] sm:$0xff] }
 0x4b9   :  { %v868_v33 = vadd.f32 1.0, %v866_v32  ;;  %v865_v34 = vsel %vm861_vm7, %v859_v28, %v863_v31  ;;  %v2640_v28 = vpack.c.bf16 %v1458_v27, %v1457_v26  ;;  %v1660_v31 = vld [vmem:[#allocation13 + $0x68] sm:$0xff] }
 0x4ba   :  { %v867_v36 = vadd.f32 1.0, %v865_v34  ;;  %2468 = vmatmul.mubr.msk.f32.vlgmr.msra.gmra.mrb[10].mxu0 %vm190_vm0, %v3284_v15  ;;  %v2648_v32 = vpack.c.bf16 %v1660_v31, %v1659_v30  ;;  %v1574_v34 = vld [vmem:[#allocation7 + $0x48] sm:$0xff]  ;;  %v1748_v27 = vld [vmem:[#allocation16 + $0x68] sm:$0xff] }
 0x4bb   :  { %v870_v42 = vmul.f32 %v868_v33, %v818_v40  ;;  %2481 = vmatprep.mubr.msk.f32.mxu0 %vm3035_vm1, %v3036_v21  ;;  %v1573_v33 = vld [vmem:[#allocation7 + $0x40] sm:$0xff]  ;;  %v3397_v40 = vld [vmem:[%s3506_s2] sm:$0xff] }
 0x4bc   :  { %v869_v41 = vmul.f32 %v867_v36, %v817_v35  ;;  %v2643_v35 = vpack.c.bf16 %v1574_v34, %v1573_v33  ;;  %v1575_v36 = vld [vmem:[#allocation7 + $0x50] sm:$0xff]  ;;  %v1750_v31 = vld [vmem:[#allocation16 + $0x78] sm:$0xff]  ;;  %v2218_v33 = vmul.f32 -1.442695, %v963_v29 }
 0x4bd   :  { %v2646_v38 = vpack.c.bf16 %v1576_v37, %v1575_v36  ;;  %v1747_v26 = vld [vmem:[#allocation16 + $0x60] sm:$0xff] }
 0x4be   :  { %2434 = vmatprep.mubr.msk.f32.mxu1 %vm190_vm0, %v869_v41  ;;  %v2656_v30 = vpack.c.bf16 %v1748_v27, %v1747_v26  ;;  %v1913_v34 = vld [vmem:[%s3518_s14] sm:$0xff] }
 0x4bf   :  { %2435 = vmatmul.mubr.msk.f32.vlgmr.msra.gmra.mrb[6].mxu1 %vm190_vm0, %v870_v42  ;;  %vm1914_vm11 = vcmp.gt.f32.partialorder %v1913_v34, 0.0  ;;  %v2031_v34 = vld [vmem:[#allocation10 + $0x48] sm:$0xff] }
 0x4c0   :  { %2616 = vmatpush3.bf16.msra.mxu1 %v3347_v39  ;;  %2456 = vmatprep.mubr.msk.f32.mxu1 %vm190_vm0, %v3278_v5  ;;  %v2221_v39 = vld [vmem:[#allocation14 + $0x2] ss:$0 sm:$0xff] }
 0x4c1   :  { %2618 = vmatprep.subr.bf16.mxu1 %v2617_v43 }
 0x4c4   :  { %2620 = vmatpush3.bf16.msra.mxu1 %v2617_v43 }
 0x4c5   :  { %2629 = vmatprep.subr.bf16.mxu1 %v3034_v17 }
 0x4c7   :  { %2457 = vmatmul.mubr.msk.f32.vlgmr.msra.gmra.mrb[8].mxu1 %vm190_vm0, %v3284_v15 }
 0x4c8   :  { %2474 = vmatprep.mubr.msk.f32.mxu1 %vm3035_vm1, %v3036_v21 }
 0x58d   :  { %v2469_v9 = vpop.f32.mrb[10].mxu0 }
 0x58e   :  { %v1255_v11 = vadd.f32 %v2469_v9, %v2225_v10  ;;  %v1249_v12 = vpop.f32.mrb[11].mxu0 }
 0x58f   :  { %v1250_v13 = vadd.f32 %v2225_v10, %v1249_v12 }
 0x591   :  { %v2634_v14 = vpack.c.bf16 %v1255_v11, %v1250_v13  ;;  %v2238_v13 = vld [vmem:[#allocation14 + $0x3] ss:$0 sm:$0xff] }
 0x592   :  { %v3365_v46 = vpop.f32.mrb[6].mxu1 }
 0x593   :  { %v3367_v47 = vpop.f32.mrb[7].mxu1  ;;  %2635 = vmatpush3.bf16.msra.mxu0 %v2634_v14 }
 0x594   :  { %2636 = vmatprep.subr.bf16.mxu0 %v3034_v17 }
 0x59a   :  { %v2458_v48 = vpop.f32.mrb[8].mxu1 }
 0x59b   :  { %v1167_v49 = vadd.f32 %v2458_v48, %v2221_v39  ;;  %v1161_v50 = vpop.f32.mrb[9].mxu1 }
 0x59c   :  { %v1162_v51 = vadd.f32 %v2221_v39, %v1161_v50 }
 0x59e   :  { %v2630_v52 = vpack.c.bf16 %v1167_v49, %v1162_v51 }
 0x5a0   :  { %2632 = vmatpush3.bf16.xpose.msk.msra.mxu1 %vm3302_vm2, %v2630_v52 }
 0x5a1   :  { %2642 = vmatprep.subr.bf16.mxu1 %v3034_v17 }
 0x5a7   :  { %2475 = vmatmul.mubr.msk.f32.vlgmr.msra.gmra.mrb[10].mxu1 %vm190_vm0, %v1079_v54 }
 0x5a8   :  { %2503 = vmatprep.mubr.msk.f32.mxu1 %vm3035_vm1, %v3036_v21  ;;  %2644 = vmatpush3.bf16.msra.mxu1 %v2643_v35 }
 0x5a9   :  { %2645 = vmatprep.subr.bf16.mxu1 %v3034_v17 }
 0x5ac   :  { %2647 = vmatpush3.bf16.msra.mxu1 %v2646_v38 }
 0x5ad   :  { %2657 = vmatprep.subr.bf16.mxu1 %v2656_v30 }
 0x5af   :  { %2504 = vmatmul.mubr.msk.f32.vlgmr.msra.gmra.mrb[12].mxu1 %vm190_vm0, %v3397_v40 }
 0x5b0   :  { %2525 = vmatprep.mubr.msk.f32.mxu1 %vm190_vm0, %v3278_v5  ;;  %2659 = vmatpush3.bf16.msra.mxu1 %v2656_v30 }
 0x67a   :  { %v1333_v62 = vpop.f32.mrb[10].mxu1 }
 0x67b   :  { %v1339_v63 = vsel %vm1338_vm8, %v1333_v62, -1e+30  ;;  %v2476_v0 = vpop.f32.mrb[11].mxu1 }
 0x67c   :  { %v1341_v1 = vsel %vm1340_vm9, %v1339_v63, -inf }
 0x67d   :  { %1342 = vmax.xlane.f32.xlu0 %v1341_v1 }
 0x682   :  { %v1654_v9 = vpop.f32.mrb[12].mxu1 }
 0x683   :  { %v2505_v10 = vpop.f32.mrb[13].mxu1  ;;  %v1655_v24 = vadd.f32 %v2236_v23, %v1654_v9 }
 0x70a   :  { %v1343_v2 = vpop.xlane.xlu0 %1342 }
 0x70b   :  { %v1344_v3 = vsub.f32 %v1339_v63, %v1343_v2  ;;  %v1661_v2 = vld [vmem:[#allocation13 + $0x70] sm:$0xff] }
 0x70d   :  { %v1345_v4 = vmul.f32 1.442695, %v1344_v3  ;;  %v1662_v3 = vld [vmem:[#allocation13 + $0x78] sm:$0xff] }
 0x70f   :  { %2715 = vpow2.f32 %v1345_v4 }
 0x719   :  { %v2716_v6 = vpop.eup %2715 }
 0x71a   :  { %v1347_v7 = vsel %vm1338_vm8, %v2716_v6, 0.0 }
 0x71b   :  { %v1348_v8 = vsel %vm1340_vm9, %v1347_v7, 0.0 }
 0x71c   :  { %1349 = vadd.xlane.f32.xlu1 %v1348_v8  ;;  %v2652_v8 = vpack.c.bf16 %v1662_v3, %v1661_v2 }
 0x7a9   :  { %v1350_v16 = vpop.xlane.xlu1 %1349 }
 0x7aa   :  { %v1351_v18 = vmax.f32 %v1350_v16, 1e-09 }
 0x7ac   :  { %2717 = vrcp.f32 %v1351_v18 }
 0x7b6   :  { %v2718_v19 = vpop.eup %2717 }
 0x7b7   :  { %v1353_v20 = vmul.f32 %v2718_v19, %v1347_v7 }
 0x7b9   :  { %2482 = vmatmul.mubr.msk.f32.vlgmr.msra.gmra.mrb[12].mxu0 %vm1340_vm9, %v1353_v20 }
 0x7ba   :  { %2492 = vmatprep.mubr.msk.f32.mxu0 %vm3035_vm1, %v3036_v21  ;;  %2638 = vmatpush3.bf16.msra.mxu0 %v2637_v25  ;;  %v3037_v25 = vmov 0  }
 0x7bb   :  { %2639 = vmatprep.subr.bf16.mxu0 %v3034_v17  ;;  %2697 = vset.pattern.permute.xlu0 %v3037_v25 }
 0x7bc   :  { %2698 = vset.pattern.permute.xlu1 %v3037_v25  ;;  %v2232_v25 = vld [vmem:[#allocation11 + $0x1] ss:$0 sm:$0xff] }
 0x7be   :  { %2641 = vmatpush3.bf16.msra.mxu0 %v2640_v28  ;;  %v1749_v28 = vld [vmem:[#allocation16 + $0x70] sm:$0xff] }
 0x7bf   :  { %2649 = vmatprep.subr.bf16.mxu0 %v2648_v32 }
 0x88c   :  { %v1423_v41 = vpop.f32.mrb[12].mxu0 }
 0x88d   :  { %v1428_v42 = vmul.f32 0.70710677, %v1423_v41  ;;  %v2483_v43 = vpop.f32.mrb[13].mxu0  ;;  %v1427_v4 = vmul.f32 0.5, %v1423_v41 }
 0x88f   :  { %v1429_v44 = vand.u32 2147483647, %v1428_v42  ;;  %vm1449_vm10 = vcmp.ge.f32.partialorder %v1428_v42, 0.0  ;;  %v971_v42 = vlaneseq }
 0x891   :  { %v1430_v45 = vmul.f32 0.3275911, %v1429_v44  ;;  %v1443_v48 = vsub.f32 0.0, %v1429_v44  ;;  %v972_v43 = vshrl.u32 %v971_v42, 7 }
 0x893   :  { %v1431_v39 = vadd.f32 1.0, %v1430_v45  ;;  %v1444_v50 = vmul.f32 %v1443_v48, %v1429_v44  ;;  %v3432_v44 = vsub.s32 0, %v972_v43  ;;  %v2234_v48 = vld [vmem:[%s3511_s7 + $0x1] sm:$0x1] }
 0x895   :  { %2719 = vrcp.f32 %v1431_v39  ;;  %v1445_v53 = vmul.f32 1.442695, %v1444_v50  ;;  %v2235_v50 = vmul.f32 -1.442695, %v2234_v48 }
 0x897   :  { %2721 = vpow2.f32 %v1445_v53 }
 0x898   :  { %2723 = vpow2.f32 %v2218_v33  ;;  %v2030_v33 = vld [vmem:[#allocation10 + $0x40] sm:$0xff] }
 0x89f   :  { %v2720_v49 = vpop.eup %2719 }
 0x8a0   :  { %v1434_v51 = vmul.f32 1.0614054, %v2720_v49 }
 0x8a1   :  { %v2722_v61 = vpop.eup %2721 }
 0x8a2   :  { %v1435_v52 = vadd.f32 -1.4531521, %v1434_v51  ;;  %v2724_v36 = vpop.eup %2723 }
 0x8a4   :  { %v1436_v54 = vmul.f32 %v2720_v49, %v1435_v52 }
 0x8a6   :  { %v1437_v55 = vadd.f32 1.4214138, %v1436_v54 }
 0x8a8   :  { %v1438_v56 = vmul.f32 %v2720_v49, %v1437_v55 }
 0x8aa   :  { %v1439_v57 = vadd.f32 -0.28449672, %v1438_v56 }
 0x8ac   :  { %v1440_v58 = vmul.f32 %v2720_v49, %v1439_v57 }
 0x8ae   :  { %v1441_v59 = vadd.f32 0.2548296, %v1440_v58 }
 0x8b0   :  { %v1442_v60 = vmul.f32 %v2720_v49, %v1441_v59 }
 0x8b2   :  { %v1447_v62 = vmul.f32 %v2722_v61, %v1442_v60 }
 0x8b4   :  { %v1448_v63 = vsub.f32 1.0, %v1447_v62 }
 0x8b6   :  { %v1450_v0 = vsub.f32 0.0, %v1448_v63 }
 0x8b8   :  { %v1451_v1 = vsel %vm1449_vm10, %v1448_v63, %v1450_v0  ;;  %v2242_v0 = vld [vmem:[%s3515_s11 + $0x3] ss:$0 sm:$0xff] }
 0x8b9   :  { %v1452_v6 = vadd.f32 1.0, %v1451_v1 }
 0x8bb   :  { %v1453_v7 = vmul.f32 %v1452_v6, %v1427_v4 }
 0x8bd   :  { %2493 = vmatmul.mubr.msk.f32.vlgmr.msra.gmra.mrb[14].mxu0 %vm190_vm0, %v1453_v7  ;;  %v2215_v7 = vld [vmem:[#allocation11] ss:$0 sm:$0xff] }
 0x8be   :  { %2651 = vmatpush3.bf16.msra.mxu0 %v2648_v32  ;;  %2514 = vmatprep.mubr.msk.f32.mxu0 %vm190_vm0, %v3278_v5  ;;  %v2660_v32 = vpack.c.bf16 %v1750_v31, %v1749_v28 }
 0x8bf   :  { %2653 = vmatprep.subr.bf16.mxu0 %v2652_v8 }
 0x8c0   :  { %2661 = vmatprep.subr.bf16.mxu1 %v2660_v32 }
 0x8c1   :  { %2663 = vmatpush3.bf16.msra.mxu1 %v2660_v32 }
 0x8c2   :  { %2655 = vmatpush3.bf16.msra.mxu0 %v2652_v8  ;;  %2671 = vmatprep.subr.bf16.mxu1 %v3034_v17 }
 0x8c3   :  { %2664 = vmatprep.subr.bf16.mxu0 %v3034_v17 }
 0x8c4   :  { %2526 = vmatmul.mubr.msk.f32.vlgmr.msra.gmra.mrb[14].mxu1 %vm190_vm0, %v3284_v15 }
 0x8c5   :  { %2515 = vmatmul.mubr.msk.f32.vlgmr.msra.gmra.mrb[16].mxu0 %vm190_vm0, %v3284_v15  ;;  %2550 = vmatprep.mubr.msk.f32.mxu1 %vm3035_vm1, %v3036_v21 }
 0x8c6   :  { %2532 = vmatprep.mubr.msk.f32.mxu0 %vm3035_vm1, %v3036_v21 }
 0x990   :  { %v3411_v11 = vpop.f32.mrb[14].mxu0 }
 0x991   :  { %v2494_v12 = vpop.f32.mrb[15].mxu0  ;;  %v1537_v30 = vadd.f32 %v2232_v25, %v3411_v11  ;;  %v2032_v11 = vld [vmem:[#allocation10 + $0x50] sm:$0xff] }
 0x992   :  { %v960_v12 = vadd.f32 %v3365_v46, %v2215_v7 }
 0x997   :  { %v2527_v63 = vpop.f32.mrb[14].mxu1 }
 0x998   :  { %v2516_v14 = vpop.f32.mrb[16].mxu0  ;;  %v1825_v1 = vpop.f32.mrb[15].mxu1  ;;  %v1831_v3 = vadd.f32 %v2527_v63, %v2242_v0 }
 0x999   :  { %v1743_v16 = vadd.f32 %v2516_v14, %v2238_v13  ;;  %v1737_v18 = vpop.f32.mrb[17].mxu0  ;;  %v1826_v4 = vadd.f32 %v2242_v0, %v1825_v1 }
 0x99a   :  { %v1738_v19 = vadd.f32 %v2238_v13, %v1737_v18  ;;  %v955_v13 = vadd.f32 %v2215_v7, %v3367_v47 }
 0x99b   :  { %v2669_v6 = vpack.c.bf16 %v1831_v3, %v1826_v4 }
 0x99c   :  { %v2665_v20 = vpack.c.bf16 %v1743_v16, %v1738_v19 }
 0x99e   :  { %2667 = vmatpush3.bf16.xpose.msk.msra.mxu0 %vm3302_vm2, %v2665_v20 }
 0x99f   :  { %2668 = vmatprep.subr.bf16.mxu0 %v3034_v17 }
 0x9a5   :  { %2533 = vmatmul.mubr.msk.f32.vlgmr.msra.gmra.mrb[18].mxu0 %vm190_vm0, %v1655_v24 }
 0x9a6   :  { %2539 = vmatprep.mubr.msk.f32.mxu0 %vm3035_vm1, %v3036_v21  ;;  %v967_v21 = vadd.f32 1.0, %v2724_v36  ;;  %2670 = vmatpush3.bf16.msra.mxu0 %v2669_v6  ;;  %v2033_v36 = vld [vmem:[#allocation10 + $0x58] sm:$0xff] }
 0x9a8   :  { %2725 = vrcp.f32 %v967_v21 }
 0x9a9   :  { %2727 = vpow2.f32 %v2235_v50 }
 0x9b2   :  { %v2726_v45 = vpop.eup %2725 }
 0x9b3   :  { %v974_v39 = vrot.slane %v2726_v45, %v3432_v44  ;;  %v2728_v53 = vpop.eup %2727  ;;  %v981_v58 = vsub.f32 1.0, %v2726_v45 }
 0x9b4   :  { %v1545_v57 = vadd.f32 1.0, %v2728_v53 }
 0x9b5   :  { %v986_v59 = vrot.slane %v981_v58, %v3432_v44 }
 0xa78   :  { %v1909_v35 = vpop.f32.mrb[18].mxu0 }
 0xa79   :  { %v1915_v37 = vsel %vm1914_vm11, %v1909_v35, -1e+30  ;;  %v2534_v38 = vpop.f32.mrb[19].mxu0  ;;  %v2672_v35 = vpack.c.bf16 %v2031_v34, %v2030_v33 }
 0xa7a   :  { %v1916_v41 = vsel %vm1340_vm9, %v1915_v37, -inf }
 0xa7b   :  { %1917 = vmax.xlane.f32.xlu0 %v1916_v41  ;;  %2673 = vmatpush3.bf16.msra.mxu1 %v2672_v35 }
 0xa7c   :  { %2674 = vmatprep.subr.bf16.mxu1 %v3034_v17 }
 0xa91   :  { %976 = vperm.xlu0 %2697, %v974_v39  }
 0xb08   :  { %v1918_v49 = vpop.xlane.xlu0 %1917 }
 0xb09   :  { %v1919_v51 = vsub.f32 %v1915_v37, %v1918_v49  ;;  %v2675_v37 = vpack.c.bf16 %v2033_v36, %v2032_v11 }
 0xb0b   :  { %v1920_v52 = vmul.f32 1.442695, %v1919_v51  ;;  %2676 = vmatpush3.bf16.msra.mxu1 %v2675_v37 }
 0xb0d   :  { %2729 = vpow2.f32 %v1920_v52 }
 0xb0e   :  { %2731 = vrcp.f32 %v1545_v57 }
 0xb10   :  { %v977_v10 = vpop.permute.xlu0 %976 }
 0xb11   :  { %v979_v16 = vmul.f32 %v977_v10, %v955_v13  ;;  %v980_v18 = vmul.f32 %v977_v10, %v960_v12 }
 0xb17   :  { %v2730_v54 = vpop.eup %2729 }
 0xb18   :  { %v1922_v55 = vsel %vm1914_vm11, %v2730_v54, 0.0  ;;  %v2732_v60 = vpop.eup %2731 }
 0xb19   :  { %v1923_v56 = vsel %vm1340_vm9, %v1922_v55, 0.0  ;;  %v1552_v61 = vrot.slane %v2732_v60, %v3432_v44  ;;  %v1558_v62 = vsub.f32 1.0, %v2732_v60 }
 0xb1a   :  { %1924 = vadd.xlane.f32.xlu1 %v1923_v56 }
 0xb1b   :  { %v1563_v2 = vrot.slane %v1558_v62, %v3432_v44 }
 0xb2b   :  { %988 = vperm.xlu1 %2698, %v986_v59  }
 0xb2f   :  { %1554 = vperm.xlu1 %2698, %v1552_v61  }
 0xb33   :  { %1565 = vperm.xlu1 %2698, %v1563_v2  }
 0xba7   :  { %v1925_v8 = vpop.xlane.xlu1 %1924 }
 0xba8   :  { %v1926_v9 = vmax.f32 %v1925_v8, 1e-09 }
 0xbaa   :  { %2733 = vrcp.f32 %v1926_v9 }
 0xbab   :  { %v989_v14 = vpop.permute.xlu1 %988 }
 0xbac   :  { %v991_v19 = vmul.f32 %v989_v14, %v3278_v5  ;;  %v992_v20 = vmul.f32 %v989_v14, %v3284_v15 }
 0xbae   :  { %v993_v23 = vadd.f32 %v991_v19, %v979_v16  ;;  %v994_v24 = vadd.f32 %v992_v20, %v980_v18 }
 0xbaf   :  { %v1555_v26 = vpop.permute.xlu1 %1554 }
 0xbb0   :  { %v995_v27 = vmax.f32 %v993_v23, 0.0  ;;  %v996_v28 = vmax.f32 %v994_v24, 0.0  ;;  %v1557_v31 = vmul.f32 %v1555_v26, %v1537_v30 }
 0xbb2   :  { %997 = vst.msk [vmem:[#allocation17] sm:$0xff] %vm190_vm0, %v995_v27  ;;  %998 = vst.msk [vmem:[#allocation17 + $0x8] sm:$0xff] %vm190_vm0, %v996_v28 }
 0xbb3   :  { %v1566_v46 = vpop.permute.xlu1 %1565 }
 0xbb4   :  { %v2734_v47 = vpop.eup %2733  ;;  %v1568_v32 = vmul.f32 %v1566_v46, %v3296_v22  ;;  %v2251_v22 = vld [vmem:[%s3511_s7 + $0x2] sm:$0x1]  ;;  %s3038_s7 = smov [#allocation18]  }
 0xbb5   :  { %v1928_v5 = vmul.f32 %v2734_v47, %v1922_v55  ;;  %v2252_v38 = vmul.f32 -1.442695, %v2251_v22  ;;  %s2164_s8 = sshll.u32 %s3038_s7, 4  ;;  %s2165_s8 = int_to_ptr.vmem [resolvable:$true] %s2164_s8 }
 0xbb6   :  { %v1569_v29 = vadd.f32 %v1568_v32, %v1557_v31  ;;  %s2941_s29 = scalar_lea.vmem %s2165_s8, 128  ;;  %p2946_p3 = scmp.lt.s32.totalorder %s2165_s8, %s2165_s8 }
 0xbb7   :  { %2540 = vmatmul.mubr.msk.f32.vlgmr.msra.gmra.mrb[20].mxu0 %vm1340_vm9, %v1928_v5  ;;  %2735 = vpow2.f32 %v2252_v38  ;;  %p2942_p2 = scmp.ne.s32.totalorder %s2165_s8, %s2941_s29  ;;  %p2947_p4 = scmp.lt.s32.totalorder %s2941_s29, %s2941_s29 }
 0xbb8   :  { %v1570_v15 = vmax.f32 %v1569_v29, 0.0 }
 0xbb9   :  { %p2948_p5 = por %p2947_p4, %p2946_p3 }
 0xbba   :  { %1571 = vst.msk [vmem:[#allocation18] sm:$0xff] %vm190_vm0, %v1570_v15 }
 0xbbb   :  { %p2949_p6 = pnand %p2948_p5, %p2942_p2 }
 0xbc1   :  { %v2736_v41 = vpop.eup %2735 }
 0xbc2   :  { %v2120_v21 = vadd.f32 1.0, %v2736_v41 }
 0xbc4   :  { %2737 = vrcp.f32 %v2120_v21 }
 0xbce   :  { %v2738_v42 = vpop.eup %2737 }
 0xbcf   :  { %v2127_v43 = vrot.slane %v2738_v42, %v3432_v44  ;;  %v2133_v45 = vsub.f32 1.0, %v2738_v42 }
 0xbd1   :  { %2129 = vperm.xlu1 %2698, %v2127_v43   ;;  %v2138_v17 = vrot.slane %v2133_v45, %v3432_v44 }
 0xbd5   :  { %2140 = vperm.xlu1 %2698, %v2138_v17  }
 0xc8a   :  { %v1998_v39 = vpop.f32.mrb[20].mxu0 }
 0xc8b   :  { %v2003_v48 = vmul.f32 0.70710677, %v1998_v39  ;;  %v2541_v49 = vpop.f32.mrb[21].mxu0  ;;  %v2002_v7 = vmul.f32 0.5, %v1998_v39 }
 0xc8d   :  { %v2004_v50 = vand.u32 2147483647, %v2003_v48  ;;  %vm2024_vm12 = vcmp.ge.f32.partialorder %v2003_v48, 0.0 }
 0xc8f   :  { %v2005_v51 = vmul.f32 0.3275911, %v2004_v50  ;;  %v2018_v53 = vsub.f32 0.0, %v2004_v50 }
 0xc91   :  { %v2006_v52 = vadd.f32 1.0, %v2005_v51  ;;  %v2019_v55 = vmul.f32 %v2018_v53, %v2004_v50 }
 0xc93   :  { %2739 = vrcp.f32 %v2006_v52  ;;  %v2020_v58 = vmul.f32 1.442695, %v2019_v55 }
 0xc95   :  { %2741 = vpow2.f32 %v2020_v58 }
 0xc9d   :  { %v2740_v54 = vpop.eup %2739 }
 0xc9e   :  { %v2009_v56 = vmul.f32 1.0614054, %v2740_v54 }
 0xc9f   :  { %v2742_v1 = vpop.eup %2741 }
 0xca0   :  { %v2010_v57 = vadd.f32 -1.4531521, %v2009_v56 }
 0xca2   :  { %v2011_v59 = vmul.f32 %v2740_v54, %v2010_v57 }
 0xca4   :  { %v2012_v60 = vadd.f32 1.4214138, %v2011_v59 }
 0xca6   :  { %v2013_v61 = vmul.f32 %v2740_v54, %v2012_v60 }
 0xca8   :  { %v2014_v62 = vadd.f32 -0.28449672, %v2013_v61 }
 0xcaa   :  { %v2015_v44 = vmul.f32 %v2740_v54, %v2014_v62 }
 0xcac   :  { %v2016_v63 = vadd.f32 0.2548296, %v2015_v44 }
 0xcae   :  { %v2017_v0 = vmul.f32 %v2740_v54, %v2016_v63 }
 0xcb0   :  { %v2022_v2 = vmul.f32 %v2742_v1, %v2017_v0 }
 0xcb2   :  { %v2023_v3 = vsub.f32 1.0, %v2022_v2 }
 0xcb4   :  { %v2025_v4 = vsub.f32 0.0, %v2023_v3 }
 0xcb6   :  { %v2026_v6 = vsel %vm2024_vm12, %v2023_v3, %v2025_v4 }
 0xcb7   :  { %v2027_v8 = vadd.f32 1.0, %v2026_v6 }
 0xcb9   :  { %v2028_v9 = vmul.f32 %v2027_v8, %v2002_v7 }
 0xcbb   :  { %2551 = vmatmul.mubr.msk.f32.vlgmr.msra.gmra.mrb[16].mxu1 %vm190_vm0, %v2028_v9 }
 0xcbc   :  { %2952 = shalt.err (!%p2949_p6)
}
 0xcbd   :  { %s2953_s12 = scalar_lea.hbm %s3520_s16, 128 }
 0xcbe   :  { %p2954_p7 = scmp.ne.s32.totalorder %s3520_s16, %s2953_s12  ;;  %p2957_p8 = scmp.lt.u32.totalorder %s2953_s12, %s3520_s16 }
 0xcc0   :  { %p2959_p9 = pnand %p2957_p8, %p2954_p7 }
 0xcc2   :  { %2962 = shalt.err (!%p2959_p9)
}
 0xcc3   :  { %2167 = dma.vmem_to_hbm [thread:$0]  %s2165_s8, 128, %s3520_s16, [#allocation19]  }
 0xcc4   :  { %s2963_s13 = scalar_lea.vmem %s2152_s10, 256  ;;  %p2968_p11 = scmp.lt.s32.totalorder %s2152_s10, %s2152_s10 }
 0xcc5   :  { %p2964_p10 = scmp.ne.s32.totalorder %s2152_s10, %s2963_s13  ;;  %p2969_p12 = scmp.lt.s32.totalorder %s2963_s13, %s2963_s13 }
 0xcc7   :  { %p2970_p13 = por %p2969_p12, %p2968_p11 }
 0xcc9   :  { %p2971_p0 = pnand %p2970_p13, %p2964_p10 }
 0xccb   :  { %2974 = shalt.err (!%p2971_p0)
}
 0xccc   :  { %s2975_s2 = scalar_lea.hbm %s3519_s15, 256 }
 0xccd   :  { %p2976_p1 = scmp.ne.s32.totalorder %s3519_s15, %s2975_s2  ;;  %p2979_p2 = scmp.lt.u32.totalorder %s2975_s2, %s3519_s15 }
 0xccf   :  { %p2981_p3 = pnand %p2979_p2, %p2976_p1 }
 0xcd1   :  { %2984 = shalt.err (!%p2981_p3)
}
 0xcd2   :  { %2157 = dma.vmem_to_hbm [thread:$0]  %s2152_s10, 256, %s3519_s15, [#allocation4], %s3028_s9, %s3028_s9, %s3029_s0   ;;  %v2130_v10 = vpop.permute.xlu1 %2129  ;;  %v2249_v12 = vld [vmem:[#allocation11 + $0x2] ss:$0 sm:$0xff] }
 0xcd3   :  { %s3040_s23 = smov [#allocation20]  }
 0xcd4   :  { %s2174_s26 = sshll.u32 %s3040_s23, 4  ;;  %s2175_s26 = int_to_ptr.vmem [resolvable:$true] %s2174_s26 }
 0xcd5   :  { %s2985_s11 = scalar_lea.vmem %s2175_s26, 128  ;;  %p2990_p5 = scmp.lt.s32.totalorder %s2175_s26, %s2175_s26 }
 0xcd6   :  { %v2141_v13 = vpop.permute.xlu1 %2140  ;;  %p2986_p4 = scmp.ne.s32.totalorder %s2175_s26, %s2985_s11  ;;  %p2991_p6 = scmp.lt.s32.totalorder %s2985_s11, %s2985_s11 }
 0xcd7   :  { %v2143_v19 = vmul.f32 %v2141_v13, %v3397_v40 }
 0xcd8   :  { %p2992_p7 = por %p2991_p6, %p2990_p5 }
 0xcda   :  { %p2993_p8 = pnand %p2992_p7, %p2986_p4 }
 0xd8e   :  { %v2111_v14 = vpop.f32.mrb[16].mxu1 }
 0xd8f   :  { %v2112_v16 = vadd.f32 %v2249_v12, %v2111_v14  ;;  %v2552_v18 = vpop.f32.mrb[17].mxu1 }
 0xd91   :  { %v2132_v20 = vmul.f32 %v2130_v10, %v2112_v16 }
 0xd93   :  { %v2144_v23 = vadd.f32 %v2143_v19, %v2132_v20 }
 0xd95   :  { %2145 = vst.msk [vmem:[#allocation20] sm:$0xff] %vm190_vm0, %v2144_v23 }
 0xd96   :  { %2996 = shalt.err (!%p2993_p8)
}
 0xd97   :  { %s3532_s0 = sld [smem:[#allocation30_spill]] }
 0xd9d   :  { %s2997_s4 = scalar_lea.hbm %s3532_s0, 128 }
 0xd9e   :  { %p2998_p9 = scmp.ne.s32.totalorder %s3532_s0, %s2997_s4  ;;  %p3001_p10 = scmp.lt.u32.totalorder %s2997_s4, %s3532_s0 }
 0xda0   :  { %p3003_p11 = pnand %p3001_p10, %p2998_p9 }
 0xda2   :  { %3006 = shalt.err (!%p3003_p11)
}
 0xda3   :  { %2177 = dma.vmem_to_hbm [thread:$0]  %s2175_s26, 128, %s3532_s0, [#allocation19]  }
 0xda4   :  { %3017 = dma.done.wait [#allocation4], 256  }
 0xda5   :  { %3018 = vsyncadd [#allocation4], 4294967040 }
 0xda6   :  { %3019 = dma.done.wait [#allocation19], 256  }
 0xda7   :  { %3020 = vsyncadd [#allocation19], 4294967040 }
 0xda8   :  { %2187 = vsyncpa [#allocation3], 1 }
 0xda9   :  { %2188 = vsyncpa [#allocation6], 1 }
 0xdaa   :  { %2189 = vsyncpa [#allocation9], 1 }
 0xdab   :  { %2190 = vsyncpa [#allocation12], 1 }
 0xdac   :  { %2191 = vsyncpa [#allocation15], 1 }
 0xdad   :  { %2192 = vsyncpa [#allocation4], 1 }
 0xdae   :  { %2193 = vsyncpa [#allocation19], 1 }

</bundles_post_ra>
